<compile_context>
chip_gen: v6e
topology: v6e:2x2x1
jax: 0.10.0
libtpu: 0.0.40
codegen_flags: <defaults>
</compile_context>

<pallas_src>
import functools

import numpy as np
import jax
import jax.numpy as jnp
from jax.experimental import pallas as pl
from jax.experimental.pallas import tpu as pltpu


# ----------------------- trace-time constants (cached) -----------------------

def _interp_matrix_align_corners(in_size, out_size):
    """1-D linear interpolation matrix (out_size, in_size), align_corners=True."""
    j = np.arange(out_size)
    if out_size == 1:
        src = np.zeros(out_size, dtype=np.float64)
    else:
        src = j * (in_size - 1) / (out_size - 1)
    i0 = np.clip(np.floor(src).astype(np.int64), 0, in_size - 1)
    i1 = np.clip(i0 + 1, 0, in_size - 1)
    frac = src - i0
    M = np.zeros((out_size, in_size), dtype=np.float64)
    M[j, i0] += 1.0 - frac
    M[j, i1] += frac
    return M


@functools.lru_cache(maxsize=None)
def _interp_tables(D, H, W, Do, Ho, Wo):
    """Cached per-shape constants for the fused kernel."""
    # kron(Mh, Mw)^T applied to the flattened H*W axis in a single matmul.
    Mh = _interp_matrix_align_corners(H, Ho)
    Mw = _interp_matrix_align_corners(W, Wo)
    mhw_t = np.kron(Mh, Mw).T.astype(np.float32)          # (H*W, Ho*Wo)
    # D axis: static 2-tap lerp tables (python scalars -> unrolled VPU lerp).
    j = np.arange(Do)
    src = np.zeros(Do) if Do == 1 else j * (D - 1) / (Do - 1)
    d_lo = np.clip(np.floor(src).astype(np.int64), 0, D - 1)
    d_hi = np.clip(d_lo + 1, 0, D - 1)
    d_fr = src - d_lo
    return (mhw_t,
            tuple(int(v) for v in d_lo),
            tuple(int(v) for v in d_hi),
            tuple(float(v) for v in d_fr))


# ------------------------------ fused kernel ---------------------------------

def _make_fused_kernel(Ci, Co, D, Do, d_lo, d_hi, d_fr):
    def kernel(x_ref, mhw_ref, w_ref, b_ref, o_ref, t_ref):
        # x_ref:   (1, Ci, D, H*W)     f32  -- one batch element, native layout
        # mhw_ref: (H*W, Ho*Wo)        bf16 -- kron(Mh, Mw)^T
        # w_ref:   (Co, Ci)            f32  -- 1x1x1 conv weight
        # b_ref:   (Co, 1)             f32  -- conv bias
        # o_ref:   (1, Co, Do, Ho*Wo)  f32
        # t_ref:   (Ci, D, Ho*Wo)      f32  -- VMEM scratch (H/W-upsampled x)
        mhw = mhw_ref[...]

        # H/W trilinear factors: one lane-dense MXU matmul per input channel.
        for i in range(Ci):
            xi = x_ref[0, i].astype(jnp.bfloat16)                 # (D, H*W)
            t_ref[i] = jnp.dot(xi, mhw,
                               preferred_element_type=jnp.float32)  # (D, Ho*Wo)

        w2 = w_ref[...]
        bias = b_ref[...]

        # D factor (2-tap lerp on the VPU) + 1x1x1 conv, per output depth.
        for o in range(Do):
            lo, hi, f = d_lo[o], d_hi[o], d_fr[o]
            u = t_ref[:, lo, :]                                   # (Ci, Ho*Wo)
            if f != 0.0:
                u = u * (1.0 - f) + t_ref[:, hi, :] * f
            yo = jnp.dot(w2, u, preferred_element_type=jnp.float32) + bias
            o_ref[0, :, o, :] = yo.astype(o_ref.dtype)            # (Co, Ho*Wo)

    return kernel


# ------------------------------ module forward -------------------------------

@functools.partial(jax.jit, static_argnames=("scale_factor",))
def upsampling_forward(x, conv_w, conv_b, scale_factor=2):
    """x: (N, Ci, D, H, W) f32; conv_w: (Co, Ci, 1, 1, 1); conv_b: (Co,)."""
    N, Ci, D, H, Wd = x.shape
    Co = conv_w.shape[0]
    s = int(scale_factor)
    Do, Ho, Wo = D * s, H * s, Wd * s
    HW, HoWo = H * Wd, Ho * Wo

    mhw_t, d_lo, d_hi, d_fr = _interp_tables(D, H, Wd, Do, Ho, Wo)
    mhw = jnp.asarray(mhw_t, dtype=jnp.bfloat16)          # (HW, HoWo), constant

    x4 = x.reshape(N, Ci, D, HW)                          # free (contiguous) reshape
    w2 = conv_w.reshape(Co, Ci).astype(jnp.float32)
    b2 = conv_b.reshape(Co, 1).astype(jnp.float32)

    kernel = _make_fused_kernel(Ci, Co, D, Do, d_lo, d_hi, d_fr)

    out = pl.pallas_call(
        kernel,
        out_shape=jax.ShapeDtypeStruct((N, Co, Do, HoWo), jnp.float32),
        grid=(N,),
        in_specs=[
            pl.BlockSpec((1, Ci, D, HW), lambda n: (n, 0, 0, 0)),
            pl.BlockSpec((HW, HoWo), lambda n: (0, 0)),
            pl.BlockSpec((Co, Ci), lambda n: (0, 0)),
            pl.BlockSpec((Co, 1), lambda n: (0, 0)),
        ],
        out_specs=pl.BlockSpec((1, Co, Do, HoWo), lambda n: (n, 0, 0, 0)),
        scratch_shapes=[pltpu.VMEM((Ci, D, HoWo), jnp.float32)],
        compiler_params=pltpu.CompilerParams(
            dimension_semantics=("parallel",),
            vmem_limit_bytes=32 * 1024 * 1024,
        ),
    )(x4, mhw, w2, b2)

    return out.reshape(N, Co, Do, Ho, Wo)                 # free (contiguous) reshape


# ----------------------------- pure-JAX reference ----------------------------

def reference_forward(x, conv_w, conv_b, scale_factor=2):
    """Module order: trilinear (align_corners=True) upsample, then 1x1x1 conv."""
    N, Ci, D, H, Wd = x.shape
    Co = conv_w.shape[0]
    s = int(scale_factor)
    Do, Ho, Wo = D * s, H * s, Wd * s

    def coords(insz, outsz):
        j = jnp.arange(outsz)
        src = j * (insz - 1) / (outsz - 1) if outsz > 1 else jnp.zeros((outsz,))
        i0 = jnp.clip(jnp.floor(src).astype(jnp.int32), 0, insz - 1)
        i1 = jnp.clip(i0 + 1, 0, insz - 1)
        return i0, i1, (src - i0).astype(jnp.float32)

    d0, d1, fd = coords(D, Do)
    h0, h1, fh = coords(H, Ho)
    w0, w1, fw = coords(Wd, Wo)

    xw = x[..., w0] * (1 - fw) + x[..., w1] * fw
    xh = xw[..., h0, :] * (1 - fh)[:, None] + xw[..., h1, :] * fh[:, None]
    xd = (xh[..., d0, :, :] * (1 - fd)[:, None, None]
          + xh[..., d1, :, :] * fd[:, None, None])

    W2 = conv_w.reshape(Co, Ci)
    y = jnp.einsum("oc,ncdhw->nodhw", W2, xd) + conv_b[None, :, None, None, None]
    return y


# ----------------------------------- main -------------------------------------

if __name__ == "__main__":
    key = jax.random.PRNGKey(0)
    k1, k2, k3 = jax.random.split(key, 3)

    N, Ci, Co = 2, 4, 8
    D = H = W = 8
    scale_factor = 2   # PyTorch F.interpolate semantics: output = input * 2

    x = jax.random.normal(k1, (N, Ci, D, H, W), jnp.float32)
    conv_w = jax.random.normal(k2, (Co, Ci, 1, 1, 1), jnp.float32) * 0.1
    conv_b = jax.random.normal(k3, (Co,), jnp.float32) * 0.1

    out = upsampling_forward(x, conv_w, conv_b, scale_factor=scale_factor)
    out = jax.block_until_ready(out)

    ref = reference_forward(x, conv_w, conv_b, scale_factor)
    ref = jax.block_until_ready(ref)

    assert out.shape == (N, Co, scale_factor * D, scale_factor * H,
                         scale_factor * W), out.shape
    np.testing.assert_allclose(np.asarray(out), np.asarray(ref),
                               rtol=2e-2, atol=2e-2)
    print("KERNEL_OK")
</pallas_src>

<mosaic_0001>
module attributes {stable_mosaic.version = 11 : i64} {
  func.func @kernel(%arg0: i32, %arg1: memref<1x4x8x64xf32, #tpu.memory_space<vmem>>, %arg2: memref<64x256xbf16, #tpu.memory_space<vmem>>, %arg3: memref<8x4xf32, #tpu.memory_space<vmem>>, %arg4: memref<8x1xf32, #tpu.memory_space<vmem>>, %arg5: memref<1x8x16x256xf32, #tpu.memory_space<vmem>>, %arg6: memref<4x8x256xf32, #tpu.memory_space<vmem>>) attributes {dimension_semantics = [#tpu.dimension_semantics<parallel>], iteration_bounds = array<i64: 2>, scalar_prefetch = 0 : i64, scratch_operands = 1 : i64, tpu.core_type = #tpu.core_type<tc>, window_params = [{transform_indices = @transform_0, window_bounds = array<i64: 1, 4, 8, 64>}, {pipeline_mode = #tpu.pipeline_mode<synchronous>, transform_indices = @transform_1, window_bounds = array<i64: 64, 256>}, {pipeline_mode = #tpu.pipeline_mode<synchronous>, transform_indices = @transform_2, window_bounds = array<i64: 8, 4>}, {pipeline_mode = #tpu.pipeline_mode<synchronous>, transform_indices = @transform_3, window_bounds = array<i64: 8, 1>}, {transform_indices = @transform_4, window_bounds = array<i64: 1, 8, 16, 256>}]} {
    %c0 = arith.constant 0 : index
    %c0_0 = arith.constant 0 : index
    %0 = vector.load %arg2[%c0, %c0_0] : memref<64x256xbf16, #tpu.memory_space<vmem>>, vector<64x256xbf16>
    %c0_1 = arith.constant 0 : index
    %c0_2 = arith.constant 0 : index
    %c0_3 = arith.constant 0 : index
    %c0_4 = arith.constant 0 : index
    %1 = vector.load %arg1[%c0_1, %c0_2, %c0_3, %c0_4] : memref<1x4x8x64xf32, #tpu.memory_space<vmem>>, vector<1x1x8x64xf32>
    %2 = vector.shape_cast %1 : vector<1x1x8x64xf32> to vector<8x64xf32>
    %3 = arith.truncf %2 : vector<8x64xf32> to vector<8x64xbf16>
    %cst = arith.constant dense<0.000000e+00> : vector<8x256xf32>
    %4 = tpu.matmul %3, %0, %cst {dimension_numbers = #tpu.dot_dimension_numbers<[1], [0], [0], [1], [0, 0, 1, 1], [], []>} : vector<8x64xbf16>, vector<64x256xbf16>, vector<8x256xf32> -> vector<8x256xf32>
    %c0_5 = arith.constant 0 : index
    %c0_6 = arith.constant 0 : index
    %c0_7 = arith.constant 0 : index
    %5 = vector.load %arg6[%c0_5, %c0_6, %c0_7] : memref<4x8x256xf32, #tpu.memory_space<vmem>>, vector<1x8x256xf32>
    %6 = vector.shape_cast %5 : vector<1x8x256xf32> to vector<8x256xf32>
    %7 = vector.shape_cast %4 : vector<8x256xf32> to vector<1x8x256xf32>
    tpu.vector_store %arg6[%c0_5, %c0_6, %c0_7], %7 {strides = array<i32>} : memref<4x8x256xf32, #tpu.memory_space<vmem>>, vector<1x8x256xf32>,
    %c0_8 = arith.constant 0 : index
    %c1 = arith.constant 1 : index
    %c0_9 = arith.constant 0 : index
    %c0_10 = arith.constant 0 : index
    %8 = vector.load %arg1[%c0_8, %c1, %c0_9, %c0_10] : memref<1x4x8x64xf32, #tpu.memory_space<vmem>>, vector<1x1x8x64xf32>
    %9 = vector.shape_cast %8 : vector<1x1x8x64xf32> to vector<8x64xf32>
    %10 = arith.truncf %9 : vector<8x64xf32> to vector<8x64xbf16>
    %cst_11 = arith.constant dense<0.000000e+00> : vector<8x256xf32>
    %11 = tpu.matmul %10, %0, %cst_11 {dimension_numbers = #tpu.dot_dimension_numbers<[1], [0], [0], [1], [0, 0, 1, 1], [], []>} : vector<8x64xbf16>, vector<64x256xbf16>, vector<8x256xf32> -> vector<8x256xf32>
    %c1_12 = arith.constant 1 : index
    %c0_13 = arith.constant 0 : index
    %c0_14 = arith.constant 0 : index
    %12 = vector.load %arg6[%c1_12, %c0_13, %c0_14] : memref<4x8x256xf32, #tpu.memory_space<vmem>>, vector<1x8x256xf32>
    %13 = vector.shape_cast %12 : vector<1x8x256xf32> to vector<8x256xf32>
    %14 = vector.shape_cast %11 : vector<8x256xf32> to vector<1x8x256xf32>
    tpu.vector_store %arg6[%c1_12, %c0_13, %c0_14], %14 {strides = array<i32>} : memref<4x8x256xf32, #tpu.memory_space<vmem>>, vector<1x8x256xf32>,
    %c0_15 = arith.constant 0 : index
    %c2 = arith.constant 2 : index
    %c0_16 = arith.constant 0 : index
    %c0_17 = arith.constant 0 : index
    %15 = vector.load %arg1[%c0_15, %c2, %c0_16, %c0_17] : memref<1x4x8x64xf32, #tpu.memory_space<vmem>>, vector<1x1x8x64xf32>
    %16 = vector.shape_cast %15 : vector<1x1x8x64xf32> to vector<8x64xf32>
    %17 = arith.truncf %16 : vector<8x64xf32> to vector<8x64xbf16>
    %cst_18 = arith.constant dense<0.000000e+00> : vector<8x256xf32>
    %18 = tpu.matmul %17, %0, %cst_18 {dimension_numbers = #tpu.dot_dimension_numbers<[1], [0], [0], [1], [0, 0, 1, 1], [], []>} : vector<8x64xbf16>, vector<64x256xbf16>, vector<8x256xf32> -> vector<8x256xf32>
    %c2_19 = arith.constant 2 : index
    %c0_20 = arith.constant 0 : index
    %c0_21 = arith.constant 0 : index
    %19 = vector.load %arg6[%c2_19, %c0_20, %c0_21] : memref<4x8x256xf32, #tpu.memory_space<vmem>>, vector<1x8x256xf32>
    %20 = vector.shape_cast %19 : vector<1x8x256xf32> to vector<8x256xf32>
    %21 = vector.shape_cast %18 : vector<8x256xf32> to vector<1x8x256xf32>
    tpu.vector_store %arg6[%c2_19, %c0_20, %c0_21], %21 {strides = array<i32>} : memref<4x8x256xf32, #tpu.memory_space<vmem>>, vector<1x8x256xf32>,
    %c0_22 = arith.constant 0 : index
    %c3 = arith.constant 3 : index
    %c0_23 = arith.constant 0 : index
    %c0_24 = arith.constant 0 : index
    %22 = vector.load %arg1[%c0_22, %c3, %c0_23, %c0_24] : memref<1x4x8x64xf32, #tpu.memory_space<vmem>>, vector<1x1x8x64xf32>
    %23 = vector.shape_cast %22 : vector<1x1x8x64xf32> to vector<8x64xf32>
    %24 = arith.truncf %23 : vector<8x64xf32> to vector<8x64xbf16>
    %cst_25 = arith.constant dense<0.000000e+00> : vector<8x256xf32>
    %25 = tpu.matmul %24, %0, %cst_25 {dimension_numbers = #tpu.dot_dimension_numbers<[1], [0], [0], [1], [0, 0, 1, 1], [], []>} : vector<8x64xbf16>, vector<64x256xbf16>, vector<8x256xf32> -> vector<8x256xf32>
    %c3_26 = arith.constant 3 : index
    %c0_27 = arith.constant 0 : index
    %c0_28 = arith.constant 0 : index
    %26 = vector.load %arg6[%c3_26, %c0_27, %c0_28] : memref<4x8x256xf32, #tpu.memory_space<vmem>>, vector<1x8x256xf32>
    %27 = vector.shape_cast %26 : vector<1x8x256xf32> to vector<8x256xf32>
    %28 = vector.shape_cast %25 : vector<8x256xf32> to vector<1x8x256xf32>
    tpu.vector_store %arg6[%c3_26, %c0_27, %c0_28], %28 {strides = array<i32>} : memref<4x8x256xf32, #tpu.memory_space<vmem>>, vector<1x8x256xf32>,
    %c0_29 = arith.constant 0 : index
    %c0_30 = arith.constant 0 : index
    %29 = vector.load %arg3[%c0_29, %c0_30] : memref<8x4xf32, #tpu.memory_space<vmem>>, vector<8x4xf32>
    %c0_31 = arith.constant 0 : index
    %c0_32 = arith.constant 0 : index
    %30 = vector.load %arg4[%c0_31, %c0_32] : memref<8x1xf32, #tpu.memory_space<vmem>>, vector<8x1xf32>
    %c0_33 = arith.constant 0 : index
    %c0_34 = arith.constant 0 : index
    %c0_35 = arith.constant 0 : index
    %31 = vector.load %arg6[%c0_33, %c0_34, %c0_35] : memref<4x8x256xf32, #tpu.memory_space<vmem>>, vector<4x1x256xf32>
    %32 = vector.shape_cast %31 : vector<4x1x256xf32> to vector<4x256xf32>
    %cst_36 = arith.constant dense<0.000000e+00> : vector<8x256xf32>
    %33 = tpu.matmul %29, %32, %cst_36 {dimension_numbers = #tpu.dot_dimension_numbers<[1], [0], [0], [1], [0, 0, 1, 1], [], []>} : vector<8x4xf32>, vector<4x256xf32>, vector<8x256xf32> -> vector<8x256xf32>
    %34 = vector.broadcast %30 : vector<8x1xf32> to vector<8x256xf32>
    %35 = arith.addf %33, %34 : vector<8x256xf32>
    %c0_37 = arith.constant 0 : index
    %c0_38 = arith.constant 0 : index
    %c0_39 = arith.constant 0 : index
    %c0_40 = arith.constant 0 : index
    %36 = vector.load %arg5[%c0_37, %c0_38, %c0_39, %c0_40] : memref<1x8x16x256xf32, #tpu.memory_space<vmem>>, vector<1x8x1x256xf32>
    %37 = vector.shape_cast %36 : vector<1x8x1x256xf32> to vector<8x256xf32>
    %38 = vector.shape_cast %35 : vector<8x256xf32> to vector<1x8x1x256xf32>
    tpu.vector_store %arg5[%c0_37, %c0_38, %c0_39, %c0_40], %38 {strides = array<i32>} : memref<1x8x16x256xf32, #tpu.memory_space<vmem>>, vector<1x8x1x256xf32>,
    %c0_41 = arith.constant 0 : index
    %c0_42 = arith.constant 0 : index
    %c0_43 = arith.constant 0 : index
    %39 = vector.load %arg6[%c0_41, %c0_42, %c0_43] : memref<4x8x256xf32, #tpu.memory_space<vmem>>, vector<4x1x256xf32>
    %40 = vector.shape_cast %39 : vector<4x1x256xf32> to vector<4x256xf32>
    %cst_44 = arith.constant 0.533333361 : f32
    %41 = vector.broadcast %cst_44 : f32 to vector<4x256xf32>
    %42 = arith.mulf %40, %41 : vector<4x256xf32>
    %c0_45 = arith.constant 0 : index
    %c1_46 = arith.constant 1 : index
    %c0_47 = arith.constant 0 : index
    %43 = vector.load %arg6[%c0_45, %c1_46, %c0_47] : memref<4x8x256xf32, #tpu.memory_space<vmem>>, vector<4x1x256xf32>
    %44 = vector.shape_cast %43 : vector<4x1x256xf32> to vector<4x256xf32>
    %cst_48 = arith.constant 0.466666669 : f32
    %45 = vector.broadcast %cst_48 : f32 to vector<4x256xf32>
    %46 = arith.mulf %44, %45 : vector<4x256xf32>
    %47 = arith.addf %42, %46 : vector<4x256xf32>
    %cst_49 = arith.constant dense<0.000000e+00> : vector<8x256xf32>
    %48 = tpu.matmul %29, %47, %cst_49 {dimension_numbers = #tpu.dot_dimension_numbers<[1], [0], [0], [1], [0, 0, 1, 1], [], []>} : vector<8x4xf32>, vector<4x256xf32>, vector<8x256xf32> -> vector<8x256xf32>
    %49 = vector.broadcast %30 : vector<8x1xf32> to vector<8x256xf32>
    %50 = arith.addf %48, %49 : vector<8x256xf32>
    %c0_50 = arith.constant 0 : index
    %c0_51 = arith.constant 0 : index
    %c1_52 = arith.constant 1 : index
    %c0_53 = arith.constant 0 : index
    %51 = vector.load %arg5[%c0_50, %c0_51, %c1_52, %c0_53] : memref<1x8x16x256xf32, #tpu.memory_space<vmem>>, vector<1x8x1x256xf32>
    %52 = vector.shape_cast %51 : vector<1x8x1x256xf32> to vector<8x256xf32>
    %53 = vector.shape_cast %50 : vector<8x256xf32> to vector<1x8x1x256xf32>
    tpu.vector_store %arg5[%c0_50, %c0_51, %c1_52, %c0_53], %53 {strides = array<i32>} : memref<1x8x16x256xf32, #tpu.memory_space<vmem>>, vector<1x8x1x256xf32>,
    %c0_54 = arith.constant 0 : index
    %c0_55 = arith.constant 0 : index
    %c0_56 = arith.constant 0 : index
    %54 = vector.load %arg6[%c0_54, %c0_55, %c0_56] : memref<4x8x256xf32, #tpu.memory_space<vmem>>, vector<4x1x256xf32>
    %55 = vector.shape_cast %54 : vector<4x1x256xf32> to vector<4x256xf32>
    %cst_57 = arith.constant 0.0666666701 : f32
    %56 = vector.broadcast %cst_57 : f32 to vector<4x256xf32>
    %57 = arith.mulf %55, %56 : vector<4x256xf32>
    %c0_58 = arith.constant 0 : index
    %c1_59 = arith.constant 1 : index
    %c0_60 = arith.constant 0 : index
    %58 = vector.load %arg6[%c0_58, %c1_59, %c0_60] : memref<4x8x256xf32, #tpu.memory_space<vmem>>, vector<4x1x256xf32>
    %59 = vector.shape_cast %58 : vector<4x1x256xf32> to vector<4x256xf32>
    %cst_61 = arith.constant 0.933333337 : f32
    %60 = vector.broadcast %cst_61 : f32 to vector<4x256xf32>
    %61 = arith.mulf %59, %60 : vector<4x256xf32>
    %62 = arith.addf %57, %61 : vector<4x256xf32>
    %cst_62 = arith.constant dense<0.000000e+00> : vector<8x256xf32>
    %63 = tpu.matmul %29, %62, %cst_62 {dimension_numbers = #tpu.dot_dimension_numbers<[1], [0], [0], [1], [0, 0, 1, 1], [], []>} : vector<8x4xf32>, vector<4x256xf32>, vector<8x256xf32> -> vector<8x256xf32>
    %64 = vector.broadcast %30 : vector<8x1xf32> to vector<8x256xf32>
    %65 = arith.addf %63, %64 : vector<8x256xf32>
    %c0_63 = arith.constant 0 : index
    %c0_64 = arith.constant 0 : index
    %c2_65 = arith.constant 2 : index
    %c0_66 = arith.constant 0 : index
    %66 = vector.load %arg5[%c0_63, %c0_64, %c2_65, %c0_66] : memref<1x8x16x256xf32, #tpu.memory_space<vmem>>, vector<1x8x1x256xf32>
    %67 = vector.shape_cast %66 : vector<1x8x1x256xf32> to vector<8x256xf32>
    %68 = vector.shape_cast %65 : vector<8x256xf32> to vector<1x8x1x256xf32>
    tpu.vector_store %arg5[%c0_63, %c0_64, %c2_65, %c0_66], %68 {strides = array<i32>} : memref<1x8x16x256xf32, #tpu.memory_space<vmem>>, vector<1x8x1x256xf32>,
    %c0_67 = arith.constant 0 : index
    %c1_68 = arith.constant 1 : index
    %c0_69 = arith.constant 0 : index
    %69 = vector.load %arg6[%c0_67, %c1_68, %c0_69] : memref<4x8x256xf32, #tpu.memory_space<vmem>>, vector<4x1x256xf32>
    %70 = vector.shape_cast %69 : vector<4x1x256xf32> to vector<4x256xf32>
    %cst_70 = arith.constant 6.000000e-01 : f32
    %71 = vector.broadcast %cst_70 : f32 to vector<4x256xf32>
    %72 = arith.mulf %70, %71 : vector<4x256xf32>
    %c0_71 = arith.constant 0 : index
    %c2_72 = arith.constant 2 : index
    %c0_73 = arith.constant 0 : index
    %73 = vector.load %arg6[%c0_71, %c2_72, %c0_73] : memref<4x8x256xf32, #tpu.memory_space<vmem>>, vector<4x1x256xf32>
    %74 = vector.shape_cast %73 : vector<4x1x256xf32> to vector<4x256xf32>
    %cst_74 = arith.constant 4.000000e-01 : f32
    %75 = vector.broadcast %cst_74 : f32 to vector<4x256xf32>
    %76 = arith.mulf %74, %75 : vector<4x256xf32>
    %77 = arith.addf %72, %76 : vector<4x256xf32>
    %cst_75 = arith.constant dense<0.000000e+00> : vector<8x256xf32>
    %78 = tpu.matmul %29, %77, %cst_75 {dimension_numbers = #tpu.dot_dimension_numbers<[1], [0], [0], [1], [0, 0, 1, 1], [], []>} : vector<8x4xf32>, vector<4x256xf32>, vector<8x256xf32> -> vector<8x256xf32>
    %79 = vector.broadcast %30 : vector<8x1xf32> to vector<8x256xf32>
    %80 = arith.addf %78, %79 : vector<8x256xf32>
    %c0_76 = arith.constant 0 : index
    %c0_77 = arith.constant 0 : index
    %c3_78 = arith.constant 3 : index
    %c0_79 = arith.constant 0 : index
    %81 = vector.load %arg5[%c0_76, %c0_77, %c3_78, %c0_79] : memref<1x8x16x256xf32, #tpu.memory_space<vmem>>, vector<1x8x1x256xf32>
    %82 = vector.shape_cast %81 : vector<1x8x1x256xf32> to vector<8x256xf32>
    %83 = vector.shape_cast %80 : vector<8x256xf32> to vector<1x8x1x256xf32>
    tpu.vector_store %arg5[%c0_76, %c0_77, %c3_78, %c0_79], %83 {strides = array<i32>} : memref<1x8x16x256xf32, #tpu.memory_space<vmem>>, vector<1x8x1x256xf32>,
    %c0_80 = arith.constant 0 : index
    %c1_81 = arith.constant 1 : index
    %c0_82 = arith.constant 0 : index
    %84 = vector.load %arg6[%c0_80, %c1_81, %c0_82] : memref<4x8x256xf32, #tpu.memory_space<vmem>>, vector<4x1x256xf32>
    %85 = vector.shape_cast %84 : vector<4x1x256xf32> to vector<4x256xf32>
    %cst_83 = arith.constant 0.13333334 : f32
    %86 = vector.broadcast %cst_83 : f32 to vector<4x256xf32>
    %87 = arith.mulf %85, %86 : vector<4x256xf32>
    %c0_84 = arith.constant 0 : index
    %c2_85 = arith.constant 2 : index
    %c0_86 = arith.constant 0 : index
    %88 = vector.load %arg6[%c0_84, %c2_85, %c0_86] : memref<4x8x256xf32, #tpu.memory_space<vmem>>, vector<4x1x256xf32>
    %89 = vector.shape_cast %88 : vector<4x1x256xf32> to vector<4x256xf32>
    %cst_87 = arith.constant 0.866666674 : f32
    %90 = vector.broadcast %cst_87 : f32 to vector<4x256xf32>
    %91 = arith.mulf %89, %90 : vector<4x256xf32>
    %92 = arith.addf %87, %91 : vector<4x256xf32>
    %cst_88 = arith.constant dense<0.000000e+00> : vector<8x256xf32>
    %93 = tpu.matmul %29, %92, %cst_88 {dimension_numbers = #tpu.dot_dimension_numbers<[1], [0], [0], [1], [0, 0, 1, 1], [], []>} : vector<8x4xf32>, vector<4x256xf32>, vector<8x256xf32> -> vector<8x256xf32>
    %94 = vector.broadcast %30 : vector<8x1xf32> to vector<8x256xf32>
    %95 = arith.addf %93, %94 : vector<8x256xf32>
    %c0_89 = arith.constant 0 : index
    %c0_90 = arith.constant 0 : index
    %c4 = arith.constant 4 : index
    %c0_91 = arith.constant 0 : index
    %96 = vector.load %arg5[%c0_89, %c0_90, %c4, %c0_91] : memref<1x8x16x256xf32, #tpu.memory_space<vmem>>, vector<1x8x1x256xf32>
    %97 = vector.shape_cast %96 : vector<1x8x1x256xf32> to vector<8x256xf32>
    %98 = vector.shape_cast %95 : vector<8x256xf32> to vector<1x8x1x256xf32>
    tpu.vector_store %arg5[%c0_89, %c0_90, %c4, %c0_91], %98 {strides = array<i32>} : memref<1x8x16x256xf32, #tpu.memory_space<vmem>>, vector<1x8x1x256xf32>,
    %c0_92 = arith.constant 0 : index
    %c2_93 = arith.constant 2 : index
    %c0_94 = arith.constant 0 : index
    %99 = vector.load %arg6[%c0_92, %c2_93, %c0_94] : memref<4x8x256xf32, #tpu.memory_space<vmem>>, vector<4x1x256xf32>
    %100 = vector.shape_cast %99 : vector<4x1x256xf32> to vector<4x256xf32>
    %cst_95 = arith.constant 0.666666686 : f32
    %101 = vector.broadcast %cst_95 : f32 to vector<4x256xf32>
    %102 = arith.mulf %100, %101 : vector<4x256xf32>
    %c0_96 = arith.constant 0 : index
    %c3_97 = arith.constant 3 : index
    %c0_98 = arith.constant 0 : index
    %103 = vector.load %arg6[%c0_96, %c3_97, %c0_98] : memref<4x8x256xf32, #tpu.memory_space<vmem>>, vector<4x1x256xf32>
    %104 = vector.shape_cast %103 : vector<4x1x256xf32> to vector<4x256xf32>
    %cst_99 = arith.constant 0.333333343 : f32
    %105 = vector.broadcast %cst_99 : f32 to vector<4x256xf32>
    %106 = arith.mulf %104, %105 : vector<4x256xf32>
    %107 = arith.addf %102, %106 : vector<4x256xf32>
    %cst_100 = arith.constant dense<0.000000e+00> : vector<8x256xf32>
    %108 = tpu.matmul %29, %107, %cst_100 {dimension_numbers = #tpu.dot_dimension_numbers<[1], [0], [0], [1], [0, 0, 1, 1], [], []>} : vector<8x4xf32>, vector<4x256xf32>, vector<8x256xf32> -> vector<8x256xf32>
    %109 = vector.broadcast %30 : vector<8x1xf32> to vector<8x256xf32>
    %110 = arith.addf %108, %109 : vector<8x256xf32>
    %c0_101 = arith.constant 0 : index
    %c0_102 = arith.constant 0 : index
    %c5 = arith.constant 5 : index
    %c0_103 = arith.constant 0 : index
    %111 = vector.load %arg5[%c0_101, %c0_102, %c5, %c0_103] : memref<1x8x16x256xf32, #tpu.memory_space<vmem>>, vector<1x8x1x256xf32>
    %112 = vector.shape_cast %111 : vector<1x8x1x256xf32> to vector<8x256xf32>
    %113 = vector.shape_cast %110 : vector<8x256xf32> to vector<1x8x1x256xf32>
    tpu.vector_store %arg5[%c0_101, %c0_102, %c5, %c0_103], %113 {strides = array<i32>} : memref<1x8x16x256xf32, #tpu.memory_space<vmem>>, vector<1x8x1x256xf32>,
    %c0_104 = arith.constant 0 : index
    %c2_105 = arith.constant 2 : index
    %c0_106 = arith.constant 0 : index
    %114 = vector.load %arg6[%c0_104, %c2_105, %c0_106] : memref<4x8x256xf32, #tpu.memory_space<vmem>>, vector<4x1x256xf32>
    %115 = vector.shape_cast %114 : vector<4x1x256xf32> to vector<4x256xf32>
    %cst_107 = arith.constant 2.000000e-01 : f32
    %116 = vector.broadcast %cst_107 : f32 to vector<4x256xf32>
    %117 = arith.mulf %115, %116 : vector<4x256xf32>
    %c0_108 = arith.constant 0 : index
    %c3_109 = arith.constant 3 : index
    %c0_110 = arith.constant 0 : index
    %118 = vector.load %arg6[%c0_108, %c3_109, %c0_110] : memref<4x8x256xf32, #tpu.memory_space<vmem>>, vector<4x1x256xf32>
    %119 = vector.shape_cast %118 : vector<4x1x256xf32> to vector<4x256xf32>
    %cst_111 = arith.constant 8.000000e-01 : f32
    %120 = vector.broadcast %cst_111 : f32 to vector<4x256xf32>
    %121 = arith.mulf %119, %120 : vector<4x256xf32>
    %122 = arith.addf %117, %121 : vector<4x256xf32>
    %cst_112 = arith.constant dense<0.000000e+00> : vector<8x256xf32>
    %123 = tpu.matmul %29, %122, %cst_112 {dimension_numbers = #tpu.dot_dimension_numbers<[1], [0], [0], [1], [0, 0, 1, 1], [], []>} : vector<8x4xf32>, vector<4x256xf32>, vector<8x256xf32> -> vector<8x256xf32>
    %124 = vector.broadcast %30 : vector<8x1xf32> to vector<8x256xf32>
    %125 = arith.addf %123, %124 : vector<8x256xf32>
    %c0_113 = arith.constant 0 : index
    %c0_114 = arith.constant 0 : index
    %c6 = arith.constant 6 : index
    %c0_115 = arith.constant 0 : index
    %126 = vector.load %arg5[%c0_113, %c0_114, %c6, %c0_115] : memref<1x8x16x256xf32, #tpu.memory_space<vmem>>, vector<1x8x1x256xf32>
    %127 = vector.shape_cast %126 : vector<1x8x1x256xf32> to vector<8x256xf32>
    %128 = vector.shape_cast %125 : vector<8x256xf32> to vector<1x8x1x256xf32>
    tpu.vector_store %arg5[%c0_113, %c0_114, %c6, %c0_115], %128 {strides = array<i32>} : memref<1x8x16x256xf32, #tpu.memory_space<vmem>>, vector<1x8x1x256xf32>,
    %c0_116 = arith.constant 0 : index
    %c3_117 = arith.constant 3 : index
    %c0_118 = arith.constant 0 : index
    %129 = vector.load %arg6[%c0_116, %c3_117, %c0_118] : memref<4x8x256xf32, #tpu.memory_space<vmem>>, vector<4x1x256xf32>
    %130 = vector.shape_cast %129 : vector<4x1x256xf32> to vector<4x256xf32>
    %cst_119 = arith.constant 0.733333349 : f32
    %131 = vector.broadcast %cst_119 : f32 to vector<4x256xf32>
    %132 = arith.mulf %130, %131 : vector<4x256xf32>
    %c0_120 = arith.constant 0 : index
    %c4_121 = arith.constant 4 : index
    %c0_122 = arith.constant 0 : index
    %133 = vector.load %arg6[%c0_120, %c4_121, %c0_122] : memref<4x8x256xf32, #tpu.memory_space<vmem>>, vector<4x1x256xf32>
    %134 = vector.shape_cast %133 : vector<4x1x256xf32> to vector<4x256xf32>
    %cst_123 = arith.constant 0.266666681 : f32
    %135 = vector.broadcast %cst_123 : f32 to vector<4x256xf32>
    %136 = arith.mulf %134, %135 : vector<4x256xf32>
    %137 = arith.addf %132, %136 : vector<4x256xf32>
    %cst_124 = arith.constant dense<0.000000e+00> : vector<8x256xf32>
    %138 = tpu.matmul %29, %137, %cst_124 {dimension_numbers = #tpu.dot_dimension_numbers<[1], [0], [0], [1], [0, 0, 1, 1], [], []>} : vector<8x4xf32>, vector<4x256xf32>, vector<8x256xf32> -> vector<8x256xf32>
    %139 = vector.broadcast %30 : vector<8x1xf32> to vector<8x256xf32>
    %140 = arith.addf %138, %139 : vector<8x256xf32>
    %c0_125 = arith.constant 0 : index
    %c0_126 = arith.constant 0 : index
    %c7 = arith.constant 7 : index
    %c0_127 = arith.constant 0 : index
    %141 = vector.load %arg5[%c0_125, %c0_126, %c7, %c0_127] : memref<1x8x16x256xf32, #tpu.memory_space<vmem>>, vector<1x8x1x256xf32>
    %142 = vector.shape_cast %141 : vector<1x8x1x256xf32> to vector<8x256xf32>
    %143 = vector.shape_cast %140 : vector<8x256xf32> to vector<1x8x1x256xf32>
    tpu.vector_store %arg5[%c0_125, %c0_126, %c7, %c0_127], %143 {strides = array<i32>} : memref<1x8x16x256xf32, #tpu.memory_space<vmem>>, vector<1x8x1x256xf32>,
    %c0_128 = arith.constant 0 : index
    %c3_129 = arith.constant 3 : index
    %c0_130 = arith.constant 0 : index
    %144 = vector.load %arg6[%c0_128, %c3_129, %c0_130] : memref<4x8x256xf32, #tpu.memory_space<vmem>>, vector<4x1x256xf32>
    %145 = vector.shape_cast %144 : vector<4x1x256xf32> to vector<4x256xf32>
    %cst_131 = arith.constant 0.266666681 : f32
    %146 = vector.broadcast %cst_131 : f32 to vector<4x256xf32>
    %147 = arith.mulf %145, %146 : vector<4x256xf32>
    %c0_132 = arith.constant 0 : index
    %c4_133 = arith.constant 4 : index
    %c0_134 = arith.constant 0 : index
    %148 = vector.load %arg6[%c0_132, %c4_133, %c0_134] : memref<4x8x256xf32, #tpu.memory_space<vmem>>, vector<4x1x256xf32>
    %149 = vector.shape_cast %148 : vector<4x1x256xf32> to vector<4x256xf32>
    %cst_135 = arith.constant 0.733333349 : f32
    %150 = vector.broadcast %cst_135 : f32 to vector<4x256xf32>
    %151 = arith.mulf %149, %150 : vector<4x256xf32>
    %152 = arith.addf %147, %151 : vector<4x256xf32>
    %cst_136 = arith.constant dense<0.000000e+00> : vector<8x256xf32>
    %153 = tpu.matmul %29, %152, %cst_136 {dimension_numbers = #tpu.dot_dimension_numbers<[1], [0], [0], [1], [0, 0, 1, 1], [], []>} : vector<8x4xf32>, vector<4x256xf32>, vector<8x256xf32> -> vector<8x256xf32>
    %154 = vector.broadcast %30 : vector<8x1xf32> to vector<8x256xf32>
    %155 = arith.addf %153, %154 : vector<8x256xf32>
    %c0_137 = arith.constant 0 : index
    %c0_138 = arith.constant 0 : index
    %c8 = arith.constant 8 : index
    %c0_139 = arith.constant 0 : index
    %156 = vector.load %arg5[%c0_137, %c0_138, %c8, %c0_139] : memref<1x8x16x256xf32, #tpu.memory_space<vmem>>, vector<1x8x1x256xf32>
    %157 = vector.shape_cast %156 : vector<1x8x1x256xf32> to vector<8x256xf32>
    %158 = vector.shape_cast %155 : vector<8x256xf32> to vector<1x8x1x256xf32>
    tpu.vector_store %arg5[%c0_137, %c0_138, %c8, %c0_139], %158 {strides = array<i32>} : memref<1x8x16x256xf32, #tpu.memory_space<vmem>>, vector<1x8x1x256xf32>,
    %c0_140 = arith.constant 0 : index
    %c4_141 = arith.constant 4 : index
    %c0_142 = arith.constant 0 : index
    %159 = vector.load %arg6[%c0_140, %c4_141, %c0_142] : memref<4x8x256xf32, #tpu.memory_space<vmem>>, vector<4x1x256xf32>
    %160 = vector.shape_cast %159 : vector<4x1x256xf32> to vector<4x256xf32>
    %cst_143 = arith.constant 8.000000e-01 : f32
    %161 = vector.broadcast %cst_143 : f32 to vector<4x256xf32>
    %162 = arith.mulf %160, %161 : vector<4x256xf32>
    %c0_144 = arith.constant 0 : index
    %c5_145 = arith.constant 5 : index
    %c0_146 = arith.constant 0 : index
    %163 = vector.load %arg6[%c0_144, %c5_145, %c0_146] : memref<4x8x256xf32, #tpu.memory_space<vmem>>, vector<4x1x256xf32>
    %164 = vector.shape_cast %163 : vector<4x1x256xf32> to vector<4x256xf32>
    %cst_147 = arith.constant 2.000000e-01 : f32
    %165 = vector.broadcast %cst_147 : f32 to vector<4x256xf32>
    %166 = arith.mulf %164, %165 : vector<4x256xf32>
    %167 = arith.addf %162, %166 : vector<4x256xf32>
    %cst_148 = arith.constant dense<0.000000e+00> : vector<8x256xf32>
    %168 = tpu.matmul %29, %167, %cst_148 {dimension_numbers = #tpu.dot_dimension_numbers<[1], [0], [0], [1], [0, 0, 1, 1], [], []>} : vector<8x4xf32>, vector<4x256xf32>, vector<8x256xf32> -> vector<8x256xf32>
    %169 = vector.broadcast %30 : vector<8x1xf32> to vector<8x256xf32>
    %170 = arith.addf %168, %169 : vector<8x256xf32>
    %c0_149 = arith.constant 0 : index
    %c0_150 = arith.constant 0 : index
    %c9 = arith.constant 9 : index
    %c0_151 = arith.constant 0 : index
    %171 = vector.load %arg5[%c0_149, %c0_150, %c9, %c0_151] : memref<1x8x16x256xf32, #tpu.memory_space<vmem>>, vector<1x8x1x256xf32>
    %172 = vector.shape_cast %171 : vector<1x8x1x256xf32> to vector<8x256xf32>
    %173 = vector.shape_cast %170 : vector<8x256xf32> to vector<1x8x1x256xf32>
    tpu.vector_store %arg5[%c0_149, %c0_150, %c9, %c0_151], %173 {strides = array<i32>} : memref<1x8x16x256xf32, #tpu.memory_space<vmem>>, vector<1x8x1x256xf32>,
    %c0_152 = arith.constant 0 : index
    %c4_153 = arith.constant 4 : index
    %c0_154 = arith.constant 0 : index
    %174 = vector.load %arg6[%c0_152, %c4_153, %c0_154] : memref<4x8x256xf32, #tpu.memory_space<vmem>>, vector<4x1x256xf32>
    %175 = vector.shape_cast %174 : vector<4x1x256xf32> to vector<4x256xf32>
    %cst_155 = arith.constant 0.333333343 : f32
    %176 = vector.broadcast %cst_155 : f32 to vector<4x256xf32>
    %177 = arith.mulf %175, %176 : vector<4x256xf32>
    %c0_156 = arith.constant 0 : index
    %c5_157 = arith.constant 5 : index
    %c0_158 = arith.constant 0 : index
    %178 = vector.load %arg6[%c0_156, %c5_157, %c0_158] : memref<4x8x256xf32, #tpu.memory_space<vmem>>, vector<4x1x256xf32>
    %179 = vector.shape_cast %178 : vector<4x1x256xf32> to vector<4x256xf32>
    %cst_159 = arith.constant 0.666666686 : f32
    %180 = vector.broadcast %cst_159 : f32 to vector<4x256xf32>
    %181 = arith.mulf %179, %180 : vector<4x256xf32>
    %182 = arith.addf %177, %181 : vector<4x256xf32>
    %cst_160 = arith.constant dense<0.000000e+00> : vector<8x256xf32>
    %183 = tpu.matmul %29, %182, %cst_160 {dimension_numbers = #tpu.dot_dimension_numbers<[1], [0], [0], [1], [0, 0, 1, 1], [], []>} : vector<8x4xf32>, vector<4x256xf32>, vector<8x256xf32> -> vector<8x256xf32>
    %184 = vector.broadcast %30 : vector<8x1xf32> to vector<8x256xf32>
    %185 = arith.addf %183, %184 : vector<8x256xf32>
    %c0_161 = arith.constant 0 : index
    %c0_162 = arith.constant 0 : index
    %c10 = arith.constant 10 : index
    %c0_163 = arith.constant 0 : index
    %186 = vector.load %arg5[%c0_161, %c0_162, %c10, %c0_163] : memref<1x8x16x256xf32, #tpu.memory_space<vmem>>, vector<1x8x1x256xf32>
    %187 = vector.shape_cast %186 : vector<1x8x1x256xf32> to vector<8x256xf32>
    %188 = vector.shape_cast %185 : vector<8x256xf32> to vector<1x8x1x256xf32>
    tpu.vector_store %arg5[%c0_161, %c0_162, %c10, %c0_163], %188 {strides = array<i32>} : memref<1x8x16x256xf32, #tpu.memory_space<vmem>>, vector<1x8x1x256xf32>,
    %c0_164 = arith.constant 0 : index
    %c5_165 = arith.constant 5 : index
    %c0_166 = arith.constant 0 : index
    %189 = vector.load %arg6[%c0_164, %c5_165, %c0_166] : memref<4x8x256xf32, #tpu.memory_space<vmem>>, vector<4x1x256xf32>
    %190 = vector.shape_cast %189 : vector<4x1x256xf32> to vector<4x256xf32>
    %cst_167 = arith.constant 0.866666674 : f32
    %191 = vector.broadcast %cst_167 : f32 to vector<4x256xf32>
    %192 = arith.mulf %190, %191 : vector<4x256xf32>
    %c0_168 = arith.constant 0 : index
    %c6_169 = arith.constant 6 : index
    %c0_170 = arith.constant 0 : index
    %193 = vector.load %arg6[%c0_168, %c6_169, %c0_170] : memref<4x8x256xf32, #tpu.memory_space<vmem>>, vector<4x1x256xf32>
    %194 = vector.shape_cast %193 : vector<4x1x256xf32> to vector<4x256xf32>
    %cst_171 = arith.constant 0.13333334 : f32
    %195 = vector.broadcast %cst_171 : f32 to vector<4x256xf32>
    %196 = arith.mulf %194, %195 : vector<4x256xf32>
    %197 = arith.addf %192, %196 : vector<4x256xf32>
    %cst_172 = arith.constant dense<0.000000e+00> : vector<8x256xf32>
    %198 = tpu.matmul %29, %197, %cst_172 {dimension_numbers = #tpu.dot_dimension_numbers<[1], [0], [0], [1], [0, 0, 1, 1], [], []>} : vector<8x4xf32>, vector<4x256xf32>, vector<8x256xf32> -> vector<8x256xf32>
    %199 = vector.broadcast %30 : vector<8x1xf32> to vector<8x256xf32>
    %200 = arith.addf %198, %199 : vector<8x256xf32>
    %c0_173 = arith.constant 0 : index
    %c0_174 = arith.constant 0 : index
    %c11 = arith.constant 11 : index
    %c0_175 = arith.constant 0 : index
    %201 = vector.load %arg5[%c0_173, %c0_174, %c11, %c0_175] : memref<1x8x16x256xf32, #tpu.memory_space<vmem>>, vector<1x8x1x256xf32>
    %202 = vector.shape_cast %201 : vector<1x8x1x256xf32> to vector<8x256xf32>
    %203 = vector.shape_cast %200 : vector<8x256xf32> to vector<1x8x1x256xf32>
    tpu.vector_store %arg5[%c0_173, %c0_174, %c11, %c0_175], %203 {strides = array<i32>} : memref<1x8x16x256xf32, #tpu.memory_space<vmem>>, vector<1x8x1x256xf32>,
    %c0_176 = arith.constant 0 : index
    %c5_177 = arith.constant 5 : index
    %c0_178 = arith.constant 0 : index
    %204 = vector.load %arg6[%c0_176, %c5_177, %c0_178] : memref<4x8x256xf32, #tpu.memory_space<vmem>>, vector<4x1x256xf32>
    %205 = vector.shape_cast %204 : vector<4x1x256xf32> to vector<4x256xf32>
    %cst_179 = arith.constant 4.000000e-01 : f32
    %206 = vector.broadcast %cst_179 : f32 to vector<4x256xf32>
    %207 = arith.mulf %205, %206 : vector<4x256xf32>
    %c0_180 = arith.constant 0 : index
    %c6_181 = arith.constant 6 : index
    %c0_182 = arith.constant 0 : index
    %208 = vector.load %arg6[%c0_180, %c6_181, %c0_182] : memref<4x8x256xf32, #tpu.memory_space<vmem>>, vector<4x1x256xf32>
    %209 = vector.shape_cast %208 : vector<4x1x256xf32> to vector<4x256xf32>
    %cst_183 = arith.constant 6.000000e-01 : f32
    %210 = vector.broadcast %cst_183 : f32 to vector<4x256xf32>
    %211 = arith.mulf %209, %210 : vector<4x256xf32>
    %212 = arith.addf %207, %211 : vector<4x256xf32>
    %cst_184 = arith.constant dense<0.000000e+00> : vector<8x256xf32>
    %213 = tpu.matmul %29, %212, %cst_184 {dimension_numbers = #tpu.dot_dimension_numbers<[1], [0], [0], [1], [0, 0, 1, 1], [], []>} : vector<8x4xf32>, vector<4x256xf32>, vector<8x256xf32> -> vector<8x256xf32>
    %214 = vector.broadcast %30 : vector<8x1xf32> to vector<8x256xf32>
    %215 = arith.addf %213, %214 : vector<8x256xf32>
    %c0_185 = arith.constant 0 : index
    %c0_186 = arith.constant 0 : index
    %c12 = arith.constant 12 : index
    %c0_187 = arith.constant 0 : index
    %216 = vector.load %arg5[%c0_185, %c0_186, %c12, %c0_187] : memref<1x8x16x256xf32, #tpu.memory_space<vmem>>, vector<1x8x1x256xf32>
    %217 = vector.shape_cast %216 : vector<1x8x1x256xf32> to vector<8x256xf32>
    %218 = vector.shape_cast %215 : vector<8x256xf32> to vector<1x8x1x256xf32>
    tpu.vector_store %arg5[%c0_185, %c0_186, %c12, %c0_187], %218 {strides = array<i32>} : memref<1x8x16x256xf32, #tpu.memory_space<vmem>>, vector<1x8x1x256xf32>,
    %c0_188 = arith.constant 0 : index
    %c6_189 = arith.constant 6 : index
    %c0_190 = arith.constant 0 : index
    %219 = vector.load %arg6[%c0_188, %c6_189, %c0_190] : memref<4x8x256xf32, #tpu.memory_space<vmem>>, vector<4x1x256xf32>
    %220 = vector.shape_cast %219 : vector<4x1x256xf32> to vector<4x256xf32>
    %cst_191 = arith.constant 0.933333337 : f32
    %221 = vector.broadcast %cst_191 : f32 to vector<4x256xf32>
    %222 = arith.mulf %220, %221 : vector<4x256xf32>
    %c0_192 = arith.constant 0 : index
    %c7_193 = arith.constant 7 : index
    %c0_194 = arith.constant 0 : index
    %223 = vector.load %arg6[%c0_192, %c7_193, %c0_194] : memref<4x8x256xf32, #tpu.memory_space<vmem>>, vector<4x1x256xf32>
    %224 = vector.shape_cast %223 : vector<4x1x256xf32> to vector<4x256xf32>
    %cst_195 = arith.constant 0.0666666701 : f32
    %225 = vector.broadcast %cst_195 : f32 to vector<4x256xf32>
    %226 = arith.mulf %224, %225 : vector<4x256xf32>
    %227 = arith.addf %222, %226 : vector<4x256xf32>
    %cst_196 = arith.constant dense<0.000000e+00> : vector<8x256xf32>
    %228 = tpu.matmul %29, %227, %cst_196 {dimension_numbers = #tpu.dot_dimension_numbers<[1], [0], [0], [1], [0, 0, 1, 1], [], []>} : vector<8x4xf32>, vector<4x256xf32>, vector<8x256xf32> -> vector<8x256xf32>
    %229 = vector.broadcast %30 : vector<8x1xf32> to vector<8x256xf32>
    %230 = arith.addf %228, %229 : vector<8x256xf32>
    %c0_197 = arith.constant 0 : index
    %c0_198 = arith.constant 0 : index
    %c13 = arith.constant 13 : index
    %c0_199 = arith.constant 0 : index
    %231 = vector.load %arg5[%c0_197, %c0_198, %c13, %c0_199] : memref<1x8x16x256xf32, #tpu.memory_space<vmem>>, vector<1x8x1x256xf32>
    %232 = vector.shape_cast %231 : vector<1x8x1x256xf32> to vector<8x256xf32>
    %233 = vector.shape_cast %230 : vector<8x256xf32> to vector<1x8x1x256xf32>
    tpu.vector_store %arg5[%c0_197, %c0_198, %c13, %c0_199], %233 {strides = array<i32>} : memref<1x8x16x256xf32, #tpu.memory_space<vmem>>, vector<1x8x1x256xf32>,
    %c0_200 = arith.constant 0 : index
    %c6_201 = arith.constant 6 : index
    %c0_202 = arith.constant 0 : index
    %234 = vector.load %arg6[%c0_200, %c6_201, %c0_202] : memref<4x8x256xf32, #tpu.memory_space<vmem>>, vector<4x1x256xf32>
    %235 = vector.shape_cast %234 : vector<4x1x256xf32> to vector<4x256xf32>
    %cst_203 = arith.constant 0.466666669 : f32
    %236 = vector.broadcast %cst_203 : f32 to vector<4x256xf32>
    %237 = arith.mulf %235, %236 : vector<4x256xf32>
    %c0_204 = arith.constant 0 : index
    %c7_205 = arith.constant 7 : index
    %c0_206 = arith.constant 0 : index
    %238 = vector.load %arg6[%c0_204, %c7_205, %c0_206] : memref<4x8x256xf32, #tpu.memory_space<vmem>>, vector<4x1x256xf32>
    %239 = vector.shape_cast %238 : vector<4x1x256xf32> to vector<4x256xf32>
    %cst_207 = arith.constant 0.533333361 : f32
    %240 = vector.broadcast %cst_207 : f32 to vector<4x256xf32>
    %241 = arith.mulf %239, %240 : vector<4x256xf32>
    %242 = arith.addf %237, %241 : vector<4x256xf32>
    %cst_208 = arith.constant dense<0.000000e+00> : vector<8x256xf32>
    %243 = tpu.matmul %29, %242, %cst_208 {dimension_numbers = #tpu.dot_dimension_numbers<[1], [0], [0], [1], [0, 0, 1, 1], [], []>} : vector<8x4xf32>, vector<4x256xf32>, vector<8x256xf32> -> vector<8x256xf32>
    %244 = vector.broadcast %30 : vector<8x1xf32> to vector<8x256xf32>
    %245 = arith.addf %243, %244 : vector<8x256xf32>
    %c0_209 = arith.constant 0 : index
    %c0_210 = arith.constant 0 : index
    %c14 = arith.constant 14 : index
    %c0_211 = arith.constant 0 : index
    %246 = vector.load %arg5[%c0_209, %c0_210, %c14, %c0_211] : memref<1x8x16x256xf32, #tpu.memory_space<vmem>>, vector<1x8x1x256xf32>
    %247 = vector.shape_cast %246 : vector<1x8x1x256xf32> to vector<8x256xf32>
    %248 = vector.shape_cast %245 : vector<8x256xf32> to vector<1x8x1x256xf32>
    tpu.vector_store %arg5[%c0_209, %c0_210, %c14, %c0_211], %248 {strides = array<i32>} : memref<1x8x16x256xf32, #tpu.memory_space<vmem>>, vector<1x8x1x256xf32>,
    %c0_212 = arith.constant 0 : index
    %c7_213 = arith.constant 7 : index
    %c0_214 = arith.constant 0 : index
    %249 = vector.load %arg6[%c0_212, %c7_213, %c0_214] : memref<4x8x256xf32, #tpu.memory_space<vmem>>, vector<4x1x256xf32>
    %250 = vector.shape_cast %249 : vector<4x1x256xf32> to vector<4x256xf32>
    %cst_215 = arith.constant dense<0.000000e+00> : vector<8x256xf32>
    %251 = tpu.matmul %29, %250, %cst_215 {dimension_numbers = #tpu.dot_dimension_numbers<[1], [0], [0], [1], [0, 0, 1, 1], [], []>} : vector<8x4xf32>, vector<4x256xf32>, vector<8x256xf32> -> vector<8x256xf32>
    %252 = vector.broadcast %30 : vector<8x1xf32> to vector<8x256xf32>
    %253 = arith.addf %251, %252 : vector<8x256xf32>
    %c0_216 = arith.constant 0 : index
    %c0_217 = arith.constant 0 : index
    %c15 = arith.constant 15 : index
    %c0_218 = arith.constant 0 : index
    %254 = vector.load %arg5[%c0_216, %c0_217, %c15, %c0_218] : memref<1x8x16x256xf32, #tpu.memory_space<vmem>>, vector<1x8x1x256xf32>
    %255 = vector.shape_cast %254 : vector<1x8x1x256xf32> to vector<8x256xf32>
    %256 = vector.shape_cast %253 : vector<8x256xf32> to vector<1x8x1x256xf32>
    tpu.vector_store %arg5[%c0_216, %c0_217, %c15, %c0_218], %256 {strides = array<i32>} : memref<1x8x16x256xf32, #tpu.memory_space<vmem>>, vector<1x8x1x256xf32>,
    return
  }
  func.func @transform_0(%arg0: i32) -> (i32, i32, i32, i32) {
    %c0_i32 = arith.constant 0 : i32
    %c0_i32_0 = arith.constant 0 : i32
    %c0_i32_1 = arith.constant 0 : i32
    %c0_i32_2 = arith.constant 0 : i32
    return %arg0, %c0_i32, %c0_i32_0, %c0_i32_1 : i32, i32, i32, i32
  }
  func.func @transform_1(%arg0: i32) -> (i32, i32) {
    %c0_i32 = arith.constant 0 : i32
    %c0_i32_0 = arith.constant 0 : i32
    %c0_i32_1 = arith.constant 0 : i32
    return %c0_i32, %c0_i32_0 : i32, i32
  }
  func.func @transform_2(%arg0: i32) -> (i32, i32) {
    %c0_i32 = arith.constant 0 : i32
    %c0_i32_0 = arith.constant 0 : i32
    %c0_i32_1 = arith.constant 0 : i32
    return %c0_i32, %c0_i32_0 : i32, i32
  }
  func.func @transform_3(%arg0: i32) -> (i32, i32) {
    %c0_i32 = arith.constant 0 : i32
    %c0_i32_0 = arith.constant 0 : i32
    %c0_i32_1 = arith.constant 0 : i32
    return %c0_i32, %c0_i32_0 : i32, i32
  }
  func.func @transform_4(%arg0: i32) -> (i32, i32, i32, i32) {
    %c0_i32 = arith.constant 0 : i32
    %c0_i32_0 = arith.constant 0 : i32
    %c0_i32_1 = arith.constant 0 : i32
    %c0_i32_2 = arith.constant 0 : i32
    return %arg0, %c0_i32, %c0_i32_0, %c0_i32_1 : i32, i32, i32, i32
  }
}

</mosaic_0001>

<bundles_post_ra>
// kernel: upsampling_forward.1
= control target key start
LH: loop header
LB: loop body
LE: loop exit
PB: predicated region body
PF: predicated region fallthrough
CT: control target
= control target key end

     0   :  { %9 = vsyncpa [#allocation4], 0  ;;  %s4293_s15 = smov 0   ;;  %s5019_s0 = inlined_call_operand.vmem [shape: f32[2,4,8,64], index: 0, kind: input, shape index: {}]   ;;  %s5020_s1 = inlined_call_operand.hbm [shape: bf16[64,256], index: 1, kind: input, shape index: {}]   ;;  %s5021_s2 = inlined_call_operand.vmem [shape: f32[8,4], index: 2, kind: input, shape index: {}]   ;;  %s5022_s3 = inlined_call_operand.vmem [shape: f32[8,1], index: 3, kind: input, shape index: {}]   ;;  %s5023_s4 = inlined_call_operand.vmem [shape: f32[2,8,16,256], index: 4, kind: output, shape index: {}]  }
   0x1 LB: > { %s4299_s16 = sadd.s32 4294967295, %s4260_s15   ;;  %p3984_p0 = scmp.ge.s32.totalorder %s4260_s15, 1  ;;  %s4260_s15 = sphi %s4293_s15, %s15_s15  }
   0x2   : > { %p135_p1 = scmp.lt.s32.totalorder %s4260_s15, 3  ;;  %s4262_s17 = smov [#allocation3]  }
   0x3   : > { %s147_s18 = sshll.u32 %s4262_s17, 4  ;;  %p4195_p3 = scmp.eq.s32.totalorder %s4299_s16, 0  ;;  %s148_s18 = int_to_ptr.vmem [resolvable:$true] %s147_s18 }
   0x4   : > { %p4303_p2 = pnand %p3984_p0, %p135_p1  ;;  %s4235_s20 = scalar_lea.vmem %s148_s18, 1024 }
   0x5   : > { %p4236_p7 = scmp.ne.s32.totalorder %s148_s18, %s4235_s20  ;;  %p4243_p10 = scmp.lt.s32.totalorder %s148_s18, %s148_s18 }
   0x6   : > { %p4191_p4 = pneg %p4303_p2  ;;  %p4244_p11 = scmp.lt.s32.totalorder %s4235_s20, %s4235_s20 }
   0x8   : > { %p4192_p5 = pnand %p4195_p3, %p4191_p4  ;;  %p4245_p12 = por %p4244_p11, %p4243_p10 }
   0xa   : > { %p4226_p6 = pneg %p4192_p5 }
   0xc   : > { %p4238_p8 = pnand %p4236_p7, %p4226_p6 }
   0xe   : > { %p4239_p9 = pneg %p4238_p8 }
  0x10   : > { %p4246_p13 = pnand %p4245_p12, %p4239_p9 }
  0x12   : > { %4249 = shalt.err (!%p4246_p13)
}
  0x13   : > { %s4263_s21 = smov 128   ;;  %s4264_s22 = smov 8  }
  0x14   : > { %4194 = dma.hbm_to_vmem [thread:$0]  (!%p4192_p5), %s5020_s1, 1024, %s148_s18, [#allocation4], %s4263_s21, %s4263_s21, %s4264_s22  }
  0x15   : > { %177 = sbr.rel (%p4303_p2) target bundleno = 577 (0x241), region = 36 }
  0x1a   : > { %4255 = dma.done.wait (%p4195_p3), [#allocation4], 1024  }
  0x1b   : > { %4257 = vsyncadd (%p4195_p3), [#allocation4], 4294966272  ;;  %v4265_v0 = vmov 0   ;;  %p203_p0 = scmp.lt.s32.totalorder %s4299_s16, 1  ;;  %v4212_v1 = vld [vmem:[#allocation3 + $0x34] ss:$8 sps:$4 sm:$0xff]   ;;  %v484_v40 = vlaneseq }
  0x1c   : > { %300 = vmatprep.mubr.bf16.mxu0 %v4265_v0  ;;  %349 = vmatprep.mubr.bf16.mxu1 %v4265_v0  ;;  %v4214_v2 = vld [vmem:[#allocation3 + $0x30] ss:$8 sps:$4 sm:$0xff]   ;;  %v4215_v3 = vld [vmem:[#allocation3 + $0x24] ss:$8 sps:$4 sm:$0xff]   ;;  %v4217_v4 = vld [vmem:[#allocation3 + $0x20] ss:$8 sps:$4 sm:$0xff]  }
  0x1d   : > { %4211 = vset.pattern.permute.xlu0 %v4265_v0  ;;  %s5028_s16 = smov (!%p203_p0, %s4299_s16), 1  ;;  %276 = vmatprep.subr.bf16.mxu0 %v4212_v1  ;;  %v4218_v5 = vld [vmem:[#allocation3 + $0x14] ss:$8 sps:$4 sm:$0xff]   ;;  %v4220_v6 = vld [vmem:[#allocation3 + $0x10] ss:$8 sps:$4 sm:$0xff]   ;;  %vm264_vm0 = vcmask 523264  }
  0x1e   : > { %325 = vmatprep.subr.bf16.mxu1 %v4212_v1  ;;  %277 = vmatpush1.bf16.msra.mxu0 %v4214_v2  ;;  %s4185_s25 = sshll.u32 %s5028_s16, 5  ;;  %v4221_v7 = vld [vmem:[#allocation3 + $0x4] ss:$8 sps:$4 sm:$0xff]   ;;  %v4223_v8 = vld [vmem:[#allocation3] ss:$8 sps:$4 sm:$0xff]   ;;  %v4266_v17 = vmov 0.0  }
  0x1f   : > { %326 = vmatpush1.bf16.msra.mxu1 %v4214_v2  ;;  %278 = vmatprep.subr.bf16.mxu0 %v4215_v3  ;;  %s207_s28 = scalar_lea.vmem %s5019_s0, %s4185_s25  ;;  %v462_v20 = vld [vmem:[%s5022_s3] sm:$0xff]  ;;  %v4267_v38 = vmov 1966171168   ;;  %v485_v56 = vshrl.u32 %v484_v40, 7  ;;  %vm515_vm1 = vcmask 1043456   ;;  %vm511_vm2 = vcmask 31744  }
  0x20   : > { %327 = vmatprep.subr.bf16.mxu1 %v4215_v3  ;;  %v222_v9 = vld [vmem:[%s207_s28] sm:$0xff]  ;;  %v4002_v10 = vld [vmem:[%s207_s28 + $0x8] sm:$0xff]  ;;  %v4004_v13 = vld [vmem:[%s207_s28 + $0x10] sm:$0xff]  ;;  %472 = vperm.xlu0 %4211, %v462_v20   ;;  %v482_v39 = vunpack.c.l.s4 %v4267_v38  ;;  %s4186_s7 = sshll.u32 %s5028_s16, 8  ;;  %vm4504_vm3 = vcmp.lt.s32.totalorder %v484_v40, 256 }
  0x21   : > { %v223_v11 = vpack.c.bf16 %v222_v9, %v222_v9  ;;  %v313_v12 = vpack.c.bf16 %v4002_v10, %v4002_v10  ;;  %v4006_v14 = vld [vmem:[%s207_s28 + $0x18] sm:$0xff]  ;;  %v363_v15 = vpack.c.bf16 %v4004_v13, %v4004_v13  ;;  %s4501_s10 = scalar_lea.vmem %s5023_s4, %s4186_s7 }
  0x22   : > { %279 = vmatpush1.bf16.msra.mxu0 %v4217_v4  ;;  %v413_v16 = vpack.c.bf16 %v4006_v14, %v4006_v14  ;;  %v483_v55 = vunpack.c.0.s8 %v482_v39 }
  0x23   : > { %328 = vmatpush1.bf16.msra.mxu1 %v4217_v4  ;;  %280 = vmatprep.subr.bf16.mxu0 %v4218_v5 }
  0x24   : > { %329 = vmatprep.subr.bf16.mxu1 %v4218_v5 }
  0x26   : > { %281 = vmatpush1.bf16.msra.mxu0 %v4220_v6 }
  0x27   : > { %330 = vmatpush1.bf16.msra.mxu1 %v4220_v6  ;;  %282 = vmatprep.subr.bf16.mxu0 %v4221_v7 }
  0x28   : > { %331 = vmatprep.subr.bf16.mxu1 %v4221_v7 }
  0x2a   : > { %283 = vmatpush1.bf16.msra.mxu0 %v4223_v8 }
  0x2b   : > { %332 = vmatpush1.bf16.msra.mxu1 %v4223_v8  ;;  %375 = vmatprep.subr.bf16.mxu0 %v4212_v1 }
  0x2c   : > { %425 = vmatprep.subr.bf16.mxu1 %v4212_v1 }
  0x2d   : > { %4001 = vmatmul.mubr.msk.bf16.vlgmr.msra.gmra.mxu0 %vm264_vm0, %v223_v11 }
  0x2e   : > { %4003 = vmatmul.mubr.msk.bf16.vlgmr.msra.gmra.mxu1 %vm264_vm0, %v313_v12  ;;  %376 = vmatpush1.bf16.msra.mxu0 %v4214_v2 }
  0x2f   : > { %426 = vmatpush1.bf16.msra.mxu1 %v4214_v2  ;;  %377 = vmatprep.subr.bf16.mxu0 %v4215_v3 }
  0x30   : > { %427 = vmatprep.subr.bf16.mxu1 %v4215_v3  ;;  %399 = vmatprep.mubr.bf16.mxu0 %v4265_v0 }
  0x31   : > { %449 = vmatprep.mubr.bf16.mxu1 %v4265_v0 }
  0x32   : > { %378 = vmatpush1.bf16.msra.mxu0 %v4217_v4 }
  0x33   : > { %428 = vmatpush1.bf16.msra.mxu1 %v4217_v4  ;;  %379 = vmatprep.subr.bf16.mxu0 %v4218_v5 }
  0x34   : > { %429 = vmatprep.subr.bf16.mxu1 %v4218_v5  ;;  %v4339_v5 = vsub.s32 %v483_v55, %v485_v56 }
  0x36   : > { %380 = vmatpush1.bf16.msra.mxu0 %v4220_v6 }
  0x37   : > { %430 = vmatpush1.bf16.msra.mxu1 %v4220_v6  ;;  %381 = vmatprep.subr.bf16.mxu0 %v4221_v7 }
  0x38   : > { %431 = vmatprep.subr.bf16.mxu1 %v4221_v7 }
  0x3a   : > { %382 = vmatpush1.bf16.msra.mxu0 %v4223_v8 }
  0x3b   : > { %432 = vmatpush1.bf16.msra.mxu1 %v4223_v8 }
  0x3d   : > { %4005 = vmatmul.mubr.msk.bf16.vlgmr.msra.gmra.mxu0 %vm264_vm0, %v363_v15 }
  0x3e   : > { %4007 = vmatmul.mubr.msk.bf16.vlgmr.msra.gmra.mxu1 %vm264_vm0, %v413_v16  ;;  %584 = vmatprep.mubr.f32.mxu0 %v4266_v17 }
  0x3f   : > { %806 = vmatprep.mubr.f32.mxu1 %v4266_v17 }
  0xed   : > { %v302_v18 = vpop.f32.mrf.mxu0 }
  0xee   : > { %v351_v19 = vpop.f32.mrf.mxu1  ;;  %309 = vst [vmem:[#allocation2] sm:$0xff] %v302_v18 }
  0xef   : > { %359 = vst [vmem:[#allocation2 + $0x10] sm:$0xff] %v351_v19  ;;  %v304_v21 = vpop.f32.mrf.mxu0 }
  0xf0   : > { %v353_v22 = vpop.f32.mrf.mxu1  ;;  %310 = vst [vmem:[#allocation2 + $0x8] sm:$0xff] %v304_v21 }
  0xf1   : > { %360 = vst [vmem:[#allocation2 + $0x18] sm:$0xff] %v353_v22  ;;  %v306_v23 = vpop.f32.mrf.mxu0 }
  0xf2   : > { %v355_v24 = vpop.f32.mrf.mxu1 }
  0xf3   : > { %v307_v25 = vpop.f32.mrf.mxu0 }
  0xf4   : > { %v356_v26 = vpop.f32.mrf.mxu1 }
  0xf7   : > { %v678_v27 = vld [vmem:[#allocation2] ss:$8 sm:$0x3]  ;;  %v687_v29 = vld [vmem:[#allocation2 + $0x1] ss:$8 sm:$0x3] }
  0xf8   : > { %v679_v28 = vld [vmem:[#allocation2 + $0x10] ss:$8 sm:$0x3]  ;;  %v689_v30 = vld [vmem:[#allocation2 + $0x11] ss:$8 sm:$0x3] }
  0xf9   : > { %v682_v31 = vmul.f32 0.53333336, %v678_v27  ;;  %v897_v32 = vld [vmem:[#allocation2] ss:$8 sm:$0x3] }
  0xfa   : > { %v683_v35 = vmul.f32 0.53333336, %v679_v28  ;;  %v694_v36 = vmul.f32 0.46666667, %v687_v29  ;;  %v695_v37 = vmul.f32 0.46666667, %v689_v30 }
  0xfb   : > { %v898_v41 = vld [vmem:[#allocation2 + $0x10] ss:$8 sm:$0x3]  ;;  %v901_v42 = vmul.f32 0.06666667, %v897_v32 }
  0xfc   : > { %v905_v45 = vld [vmem:[#allocation2 + $0x1] ss:$8 sm:$0x3]  ;;  %v906_v46 = vld [vmem:[#allocation2 + $0x11] ss:$8 sm:$0x3]  ;;  %v698_v13 = vadd.f32 %v694_v36, %v682_v31  ;;  %v699_v14 = vadd.f32 %v695_v37, %v683_v35 }
  0xfd   : > { %v401_v33 = vpop.f32.mrf.mxu0  ;;  %v1112_v47 = vld [vmem:[#allocation2 + $0x1] ss:$8 sm:$0x3]  ;;  %v1113_v48 = vld [vmem:[#allocation2 + $0x11] ss:$8 sm:$0x3] }
  0xfe   : > { %v451_v34 = vpop.f32.mrf.mxu1  ;;  %409 = vst [vmem:[#allocation2 + $0x20] sm:$0xff] %v401_v33  ;;  %v463_v51 = vld [vmem:[#allocation2] ss:$8 sm:$0x3]  ;;  %v902_v53 = vmul.f32 0.06666667, %v898_v41  ;;  %v706_v32 = vcombine.low %v698_v13, %v699_v14 }
  0xff   : > { %459 = vst [vmem:[#allocation2 + $0x30] sm:$0xff] %v451_v34  ;;  %v403_v43 = vpop.f32.mrf.mxu0  ;;  %v465_v52 = vld [vmem:[#allocation2 + $0x10] ss:$8 sm:$0x3]  ;;  %v909_v57 = vmul.f32 0.93333334, %v905_v45 }
 0x100   : > { %v453_v44 = vpop.f32.mrf.mxu1  ;;  %410 = vst [vmem:[#allocation2 + $0x28] sm:$0xff] %v403_v43  ;;  %v1121_v54 = vld [vmem:[#allocation2 + $0x2] ss:$8 sm:$0x3]  ;;  %v910_v61 = vmul.f32 0.93333334, %v906_v46  ;;  %v479_v4 = vcombine.low %v463_v51, %v465_v52 }
 0x101   : > { %460 = vst [vmem:[#allocation2 + $0x38] sm:$0xff] %v453_v44  ;;  %v405_v49 = vpop.f32.mrf.mxu0  ;;  %v1123_v58 = vld [vmem:[#allocation2 + $0x12] ss:$8 sm:$0x3]  ;;  %v1116_v62 = vmul.f32 0.6, %v1112_v47  ;;  %v913_v23 = vadd.f32 %v909_v57, %v901_v42 }
 0x102   : > { %v455_v50 = vpop.f32.mrf.mxu1  ;;  %v1117_v63 = vmul.f32 0.6, %v1113_v48  ;;  %v1128_v0 = vmul.f32 0.4, %v1121_v54  ;;  %v1129_v2 = vmul.f32 0.4, %v1123_v58  ;;  %v487_v19 = vrot.slane %v479_v4, %v4339_v5 }
 0x103   : > { %v406_v59 = vpop.f32.mrf.mxu0  ;;  %v1331_v1 = vld [vmem:[#allocation2 + $0x1] ss:$8 sm:$0x3]  ;;  %v1332_v3 = vld [vmem:[#allocation2 + $0x11] ss:$8 sm:$0x3]  ;;  %v914_v24 = vadd.f32 %v910_v61, %v902_v53  ;;  %v714_v49 = vrot.slane %v706_v32, %v4339_v5 }
 0x104   : > { %v456_v60 = vpop.f32.mrf.mxu1  ;;  %v4341_v6 = vmul.f32 0.13333334, %v1331_v1  ;;  %v1339_v7 = vld [vmem:[#allocation2 + $0x2] ss:$8 sm:$0x3]  ;;  %v1132_v52 = vadd.f32 %v1128_v0, %v1116_v62  ;;  %v1133_v53 = vadd.f32 %v1129_v2, %v1117_v63 }
 0x105   : > { %v1336_v18 = vmul.f32 0.13333334, %v1332_v3  ;;  %v1340_v25 = vld [vmem:[#allocation2 + $0x12] ss:$8 sm:$0x3]  ;;  %v4348_v34 = vld [vmem:[%s5021_s2] sm:$0xff]  ;;  %v921_v44 = vcombine.low %v913_v23, %v914_v24 }
 0x106   : > { %v1343_v28 = vmul.f32 0.8666667, %v1339_v7  ;;  %v1344_v48 = vmul.f32 0.8666667, %v1340_v25  ;;  %v1140_v2 = vcombine.low %v1132_v52, %v1133_v53 }
 0x107   : > { %v467_v8 = vld [vmem:[#allocation2 + $0x20] ss:$8 sm:$0x3]  ;;  %v691_v21 = vld [vmem:[#allocation2 + $0x21] ss:$8 sm:$0x3]  ;;  %v929_v59 = vrot.slane %v921_v44, %v4339_v5 }
 0x108   : > { %v469_v9 = vld [vmem:[#allocation2 + $0x30] ss:$8 sm:$0x3]  ;;  %v680_v11 = vld [vmem:[#allocation2 + $0x20] ss:$8 sm:$0x3]  ;;  %v1148_v25 = vrot.slane %v1140_v2, %v4339_v5 }
 0x109   : > { %v480_v10 = vcombine.low %v467_v8, %v469_v9  ;;  %v681_v12 = vld [vmem:[#allocation2 + $0x30] ss:$8 sm:$0x3]  ;;  %v684_v15 = vmul.f32 0.53333336, %v680_v11  ;;  %v1347_v8 = vadd.f32 %v1343_v28, %v4341_v6  ;;  %v1348_v9 = vadd.f32 %v1344_v48, %v1336_v18 }
 0x10a   : > { %v685_v16 = vmul.f32 0.53333336, %v681_v12  ;;  %v693_v22 = vld [vmem:[#allocation2 + $0x31] ss:$8 sm:$0x3] }
 0x10b   : > { %v494_v20 = vrot.slane %v480_v10, %v4339_v5  ;;  %v696_v26 = vmul.f32 0.46666667, %v691_v21  ;;  %v697_v27 = vmul.f32 0.46666667, %v693_v22 }
 0x10c   : > { %v899_v31 = vld [vmem:[#allocation2 + $0x20] ss:$8 sm:$0x3]  ;;  %v900_v33 = vld [vmem:[#allocation2 + $0x30] ss:$8 sm:$0x3] }
 0x10d   : > { %v495_v29 = vcombine.low %v487_v19, %v494_v20  ;;  %v496_v30 = vcombine.high %v487_v19, %v494_v20  ;;  %v700_v35 = vadd.f32 %v696_v26, %v684_v15  ;;  %v701_v36 = vadd.f32 %v697_v27, %v685_v16  ;;  %v907_v42 = vld [vmem:[#allocation2 + $0x21] ss:$8 sm:$0x3]  ;;  %v908_v43 = vld [vmem:[#allocation2 + $0x31] ss:$8 sm:$0x3] }
 0x10e   : > { %v903_v37 = vmul.f32 0.06666667, %v899_v31  ;;  %v904_v38 = vmul.f32 0.06666667, %v900_v33  ;;  %v911_v46 = vmul.f32 0.93333334, %v907_v42  ;;  %v1355_v27 = vcombine.low %v1347_v8, %v1348_v9 }
 0x10f   : > { %v510_v39 = vrot.slane %v496_v30, %v4339_v5  ;;  %v503_v41 = vrot.slane %v495_v29, %v4339_v5  ;;  %v707_v45 = vcombine.low %v700_v35, %v701_v36  ;;  %v912_v47 = vmul.f32 0.93333334, %v908_v43  ;;  %v1114_v50 = vld [vmem:[#allocation2 + $0x21] ss:$8 sm:$0x3] }
 0x110   : > { %v1115_v51 = vld [vmem:[#allocation2 + $0x31] ss:$8 sm:$0x3]  ;;  %v915_v55 = vadd.f32 %v911_v46, %v903_v37  ;;  %v1118_v57 = vmul.f32 0.6, %v1114_v50  ;;  %v1363_v46 = vrot.slane %v1355_v27, %v4339_v5 }
 0x111   : > { %4008 = vmatprep.subr.msk.mxu0 %vm515_vm1, %v510_v39  ;;  %v721_v54 = vrot.slane %v707_v45, %v4339_v5  ;;  %v916_v56 = vadd.f32 %v912_v47, %v904_v38  ;;  %v1125_v58 = vld [vmem:[#allocation2 + $0x22] ss:$8 sm:$0x3]  ;;  %v1119_v60 = vmul.f32 0.6, %v1115_v51 }
 0x112   : > { %4009 = vmatpush1.msk.msra.mxu0 %vm515_vm1, %v503_v41  ;;  %v1127_v61 = vld [vmem:[#allocation2 + $0x32] ss:$8 sm:$0x3]  ;;  %v1130_v62 = vmul.f32 0.4, %v1125_v58 }
 0x113   : > { %4010 = vmatmul.mubr.msk.f32.vlgmr.msra.gmra.mxu0 %vm511_vm2, %v4348_v34  ;;  %v722_v1 = vcombine.low %v714_v49, %v721_v54  ;;  %v723_v3 = vcombine.high %v714_v49, %v721_v54  ;;  %v922_v4 = vcombine.low %v915_v55, %v916_v56  ;;  %v1333_v63 = vld [vmem:[#allocation2 + $0x21] ss:$8 sm:$0x3]  ;;  %v1131_v0 = vmul.f32 0.4, %v1127_v61 }
 0x114   : > { %1021 = vmatprep.mubr.f32.mxu0 %v4266_v17  ;;  %v1334_v7 = vld [vmem:[#allocation2 + $0x31] ss:$8 sm:$0x3]  ;;  %v1134_v13 = vadd.f32 %v1130_v62, %v1118_v57  ;;  %v1341_v14 = vld [vmem:[#allocation2 + $0x22] ss:$8 sm:$0x3] }
 0x115   : > { %v737_v10 = vrot.slane %v723_v3, %v4339_v5  ;;  %v936_v11 = vrot.slane %v922_v4, %v4339_v5  ;;  %v730_v12 = vrot.slane %v722_v1, %v4339_v5  ;;  %v1342_v15 = vld [vmem:[#allocation2 + $0x32] ss:$8 sm:$0x3]  ;;  %v1135_v16 = vadd.f32 %v1131_v0, %v1119_v60  ;;  %v1546_v6 = vld [vmem:[#allocation2 + $0x2] ss:$8 sm:$0x3] }
 0x116   : > { %v1337_v19 = vmul.f32 0.13333334, %v1333_v63  ;;  %v1338_v20 = vmul.f32 0.13333334, %v1334_v7  ;;  %v1345_v21 = vmul.f32 0.8666667, %v1341_v14 }
 0x117   : > { %4018 = vmatprep.subr.msk.mxu1 %vm515_vm1, %v737_v10  ;;  %v937_v22 = vcombine.low %v929_v59, %v936_v11  ;;  %v938_v23 = vcombine.high %v929_v59, %v936_v11  ;;  %v1346_v24 = vmul.f32 0.8666667, %v1342_v15  ;;  %v1141_v18 = vcombine.low %v1134_v13, %v1135_v16  ;;  %v1547_v28 = vld [vmem:[#allocation2 + $0x12] ss:$8 sm:$0x3] }
 0x118   : > { %4019 = vmatpush1.msk.msra.mxu1 %vm515_vm1, %v730_v12  ;;  %v1349_v26 = vadd.f32 %v1345_v21, %v1337_v19  ;;  %v1548_v29 = vld [vmem:[#allocation2 + $0x22] ss:$8 sm:$0x3]  ;;  %v1549_v33 = vld [vmem:[#allocation2 + $0x32] ss:$8 sm:$0x3] }
 0x119   : > { %v952_v30 = vrot.slane %v938_v23, %v4339_v5  ;;  %v945_v32 = vrot.slane %v937_v22, %v4339_v5  ;;  %4020 = vmatmul.mubr.msk.f32.vlgmr.msra.gmra.mxu1 %vm511_vm2, %v4348_v34  ;;  %v1350_v31 = vadd.f32 %v1346_v24, %v1338_v20  ;;  %v1550_v35 = vmul.f32 0.6666667, %v1546_v6  ;;  %v1555_v42 = vld [vmem:[#allocation2 + $0x3] ss:$8 sm:$0x3] }
 0x11a   : > { %v1155_v36 = vrot.slane %v1141_v18, %v4339_v5  ;;  %v1551_v37 = vmul.f32 0.6666667, %v1547_v28  ;;  %v1552_v38 = vmul.f32 0.6666667, %v1548_v29  ;;  %v1553_v39 = vmul.f32 0.6666667, %v1549_v33  ;;  %1240 = vmatprep.mubr.f32.mxu1 %v4266_v17 }
 0x11b   : > { %4029 = vmatprep.subr.msk.mxu0 %vm515_vm1, %v952_v30  ;;  %v1356_v41 = vcombine.low %v1349_v26, %v1350_v31  ;;  %v1557_v43 = vld [vmem:[#allocation2 + $0x13] ss:$8 sm:$0x3]  ;;  %v1559_v47 = vld [vmem:[#allocation2 + $0x23] ss:$8 sm:$0x3] }
 0x11c   : > { %4030 = vmatpush1.msk.msra.mxu0 %vm515_vm1, %v945_v32  ;;  %v1156_v44 = vcombine.low %v1148_v25, %v1155_v36  ;;  %v1157_v45 = vcombine.high %v1148_v25, %v1155_v36  ;;  %v1561_v48 = vld [vmem:[#allocation2 + $0x33] ss:$8 sm:$0x3]  ;;  %v1562_v50 = vmul.f32 0.33333334, %v1555_v42 }
 0x11d   : > { %4031 = vmatmul.mubr.msk.f32.vlgmr.msra.gmra.mxu0 %vm511_vm2, %v4348_v34  ;;  %v1370_v49 = vrot.slane %v1356_v41, %v4339_v5  ;;  %v1563_v51 = vmul.f32 0.33333334, %v1557_v43  ;;  %v1564_v52 = vmul.f32 0.33333334, %v1559_v47  ;;  %v1565_v55 = vmul.f32 0.33333334, %v1561_v48 }
 0x11e   : > { %v1171_v53 = vrot.slane %v1157_v45, %v4339_v5  ;;  %v1164_v54 = vrot.slane %v1156_v44, %v4339_v5  ;;  %v1765_v56 = vld [vmem:[#allocation2 + $0x2] ss:$8 sm:$0x3]  ;;  %1455 = vmatprep.mubr.f32.mxu0 %v4266_v17  ;;  %v1566_v59 = vadd.f32 %v1562_v50, %v1550_v35  ;;  %v1766_v61 = vld [vmem:[#allocation2 + $0x12] ss:$8 sm:$0x3] }
 0x11f   : > { %v1371_v57 = vcombine.low %v1363_v46, %v1370_v49  ;;  %v1372_v58 = vcombine.high %v1363_v46, %v1370_v49  ;;  %v1567_v60 = vadd.f32 %v1563_v51, %v1551_v37  ;;  %v1767_v1 = vld [vmem:[#allocation2 + $0x22] ss:$8 sm:$0x3]  ;;  %v1568_v3 = vadd.f32 %v1564_v52, %v1552_v38  ;;  %v1768_v62 = vld [vmem:[#allocation2 + $0x32] ss:$8 sm:$0x3] }
 0x120   : > { %4040 = vmatprep.subr.msk.mxu1 %vm515_vm1, %v1171_v53  ;;  %v1569_v4 = vadd.f32 %v1565_v55, %v1553_v39  ;;  %v1769_v63 = vmul.f32 0.2, %v1765_v56  ;;  %v1770_v8 = vmul.f32 0.2, %v1766_v61  ;;  %v1771_v11 = vmul.f32 0.2, %v1767_v1 }
 0x121   : > { %v1386_v0 = vrot.slane %v1372_v58, %v4339_v5  ;;  %4041 = vmatpush1.msk.msra.mxu1 %vm515_vm1, %v1164_v54  ;;  %v1379_v2 = vrot.slane %v1371_v57, %v4339_v5  ;;  %v1574_v7 = vcombine.low %v1566_v59, %v1567_v60  ;;  %v1773_v9 = vld [vmem:[#allocation2 + $0x3] ss:$8 sm:$0x3]  ;;  %v1772_v12 = vmul.f32 0.2, %v1768_v62 }
 0x122   : > { %v1575_v10 = vcombine.low %v1568_v3, %v1569_v4  ;;  %v1777_v13 = vmul.f32 0.8, %v1773_v9  ;;  %4042 = vmatmul.mubr.msk.f32.vlgmr.msra.gmra.mxu1 %vm511_vm2, %v4348_v34  ;;  %v1774_v14 = vld [vmem:[#allocation2 + $0x13] ss:$8 sm:$0x3] }
 0x123   : > { %4051 = vmatprep.subr.msk.mxu0 %vm515_vm1, %v1386_v0  ;;  %v1775_v15 = vld [vmem:[#allocation2 + $0x23] ss:$8 sm:$0x3]  ;;  %1674 = vmatprep.mubr.f32.mxu1 %v4266_v17  ;;  %v1582_v16 = vrot.slane %v1574_v7, %v4339_v5  ;;  %v1776_v20 = vld [vmem:[#allocation2 + $0x33] ss:$8 sm:$0x3] }
 0x124   : > { %4052 = vmatpush1.msk.msra.mxu0 %vm515_vm1, %v1379_v2  ;;  %v1589_v19 = vrot.slane %v1575_v10, %v4339_v5  ;;  %v1778_v21 = vmul.f32 0.8, %v1774_v14  ;;  %v1781_v22 = vadd.f32 %v1777_v13, %v1769_v63  ;;  %v1779_v23 = vmul.f32 0.8, %v1775_v15 }
 0x125   : > { %v1780_v24 = vmul.f32 0.8, %v1776_v20  ;;  %4053 = vmatmul.mubr.msk.f32.vlgmr.msra.gmra.mxu0 %vm511_vm2, %v4348_v34  ;;  %v1980_v26 = vld [vmem:[#allocation2 + $0x3] ss:$8 sm:$0x3] }
 0x126   : > { %v1590_v6 = vcombine.low %v1582_v16, %v1589_v19  ;;  %v1591_v18 = vcombine.high %v1582_v16, %v1589_v19  ;;  %v1782_v25 = vadd.f32 %v1778_v21, %v1770_v8  ;;  %v1981_v27 = vld [vmem:[#allocation2 + $0x13] ss:$8 sm:$0x3]  ;;  %1889 = vmatprep.mubr.f32.mxu0 %v4266_v17  ;;  %v1783_v28 = vadd.f32 %v1779_v23, %v1771_v11  ;;  %v1982_v30 = vld [vmem:[#allocation2 + $0x23] ss:$8 sm:$0x3] }
 0x127   : > { %v1784_v29 = vadd.f32 %v1780_v24, %v1772_v12  ;;  %v1983_v32 = vld [vmem:[#allocation2 + $0x33] ss:$8 sm:$0x3]  ;;  %v1984_v36 = vmul.f32 0.73333335, %v1980_v26 }
 0x128   : > { %v1605_v31 = vrot.slane %v1591_v18, %v4339_v5  ;;  %v1789_v33 = vcombine.low %v1781_v22, %v1782_v25  ;;  %v1598_v35 = vrot.slane %v1590_v6, %v4339_v5  ;;  %v1989_v37 = vld [vmem:[#allocation2 + $0x4] ss:$8 sm:$0x3]  ;;  %v1985_v39 = vmul.f32 0.73333335, %v1981_v27 }
 0x129   : > { %v1790_v38 = vcombine.low %v1783_v28, %v1784_v29  ;;  %v1986_v41 = vmul.f32 0.73333335, %v1982_v30  ;;  %v1987_v42 = vmul.f32 0.73333335, %v1983_v32  ;;  %v1996_v48 = vmul.f32 0.26666668, %v1989_v37 }
 0x12a   : > { %4062 = vmatprep.subr.msk.mxu1 %vm515_vm1, %v1605_v31  ;;  %v1991_v43 = vld [vmem:[#allocation2 + $0x14] ss:$8 sm:$0x3]  ;;  %v1993_v44 = vld [vmem:[#allocation2 + $0x24] ss:$8 sm:$0x3]  ;;  %v1797_v45 = vrot.slane %v1789_v33, %v4339_v5 }
 0x12b   : > { %v1804_v46 = vrot.slane %v1790_v38, %v4339_v5  ;;  %4063 = vmatpush1.msk.msra.mxu1 %vm515_vm1, %v1598_v35  ;;  %v1995_v47 = vld [vmem:[#allocation2 + $0x34] ss:$8 sm:$0x3]  ;;  %v1997_v49 = vmul.f32 0.26666668, %v1991_v43  ;;  %v2000_v54 = vadd.f32 %v1996_v48, %v1984_v36 }
 0x12c   : > { %v1998_v50 = vmul.f32 0.26666668, %v1993_v44  ;;  %v1999_v51 = vmul.f32 0.26666668, %v1995_v47  ;;  %4064 = vmatmul.mubr.msk.f32.vlgmr.msra.gmra.mxu1 %vm511_vm2, %v4348_v34 }
 0x12d   : > { %v1805_v52 = vcombine.low %v1797_v45, %v1804_v46  ;;  %v1806_v53 = vcombine.high %v1797_v45, %v1804_v46  ;;  %v2199_v55 = vld [vmem:[#allocation2 + $0x3] ss:$8 sm:$0x3]  ;;  %v2200_v56 = vld [vmem:[#allocation2 + $0x13] ss:$8 sm:$0x3]  ;;  %2108 = vmatprep.mubr.f32.mxu1 %v4266_v17  ;;  %v2001_v57 = vadd.f32 %v1997_v49, %v1985_v39 }
 0x12e   : > { %v2002_v58 = vadd.f32 %v1998_v50, %v1986_v41  ;;  %v2003_v59 = vadd.f32 %v1999_v51, %v1987_v42  ;;  %v2201_v60 = vld [vmem:[#allocation2 + $0x23] ss:$8 sm:$0x3]  ;;  %v2202_v61 = vld [vmem:[#allocation2 + $0x33] ss:$8 sm:$0x3] }
 0x12f   : > { %v1820_v1 = vrot.slane %v1806_v53, %v4339_v5  ;;  %v1813_v3 = vrot.slane %v1805_v52, %v4339_v5  ;;  %v2203_v4 = vmul.f32 0.26666668, %v2199_v55  ;;  %v2204_v62 = vmul.f32 0.26666668, %v2200_v56 }
 0x130   : > { %v2008_v63 = vcombine.low %v2000_v54, %v2001_v57  ;;  %v2009_v0 = vcombine.low %v2002_v58, %v2003_v59  ;;  %v2205_v2 = vmul.f32 0.26666668, %v2201_v60  ;;  %v2206_v7 = vmul.f32 0.26666668, %v2202_v61 }
 0x131   : > { %4073 = vmatprep.subr.msk.mxu0 %vm515_vm1, %v1820_v1  ;;  %v2207_v8 = vld [vmem:[#allocation2 + $0x4] ss:$8 sm:$0x3]  ;;  %v2208_v9 = vld [vmem:[#allocation2 + $0x14] ss:$8 sm:$0x3] }
 0x132   : > { %4074 = vmatpush1.msk.msra.mxu0 %vm515_vm1, %v1813_v3  ;;  %v2016_v10 = vrot.slane %v2008_v63, %v4339_v5  ;;  %v2023_v11 = vrot.slane %v2009_v0, %v4339_v5  ;;  %v2209_v12 = vld [vmem:[#allocation2 + $0x24] ss:$8 sm:$0x3]  ;;  %v2210_v13 = vld [vmem:[#allocation2 + $0x34] ss:$8 sm:$0x3] }
 0x133   : > { %v2211_v14 = vmul.f32 0.73333335, %v2207_v8  ;;  %v2212_v15 = vmul.f32 0.73333335, %v2208_v9  ;;  %v2213_v16 = vmul.f32 0.73333335, %v2209_v12  ;;  %4075 = vmatmul.mubr.msk.f32.vlgmr.msra.gmra.mxu0 %vm511_vm2, %v4348_v34 }
 0x134   : > { %v2024_v19 = vcombine.low %v2016_v10, %v2023_v11  ;;  %v2025_v20 = vcombine.high %v2016_v10, %v2023_v11  ;;  %v2214_v21 = vmul.f32 0.73333335, %v2210_v13  ;;  %v2414_v22 = vld [vmem:[#allocation2 + $0x4] ss:$8 sm:$0x3]  ;;  %2323 = vmatprep.mubr.f32.mxu0 %v4266_v17 }
 0x135   : > { %v2215_v23 = vadd.f32 %v2211_v14, %v2203_v4  ;;  %v2216_v24 = vadd.f32 %v2212_v15, %v2204_v62  ;;  %v2217_v6 = vadd.f32 %v2213_v16, %v2205_v2  ;;  %v2415_v18 = vld [vmem:[#allocation2 + $0x14] ss:$8 sm:$0x3]  ;;  %v2416_v25 = vld [vmem:[#allocation2 + $0x24] ss:$8 sm:$0x3] }
 0x136   : > { %v2039_v26 = vrot.slane %v2025_v20, %v4339_v5  ;;  %v2218_v27 = vadd.f32 %v2214_v21, %v2206_v7  ;;  %v2032_v28 = vrot.slane %v2024_v19, %v4339_v5  ;;  %v2417_v29 = vld [vmem:[#allocation2 + $0x34] ss:$8 sm:$0x3]  ;;  %v2418_v30 = vmul.f32 0.8, %v2414_v22 }
 0x137   : > { %v2223_v32 = vcombine.low %v2215_v23, %v2216_v24  ;;  %v2419_v31 = vmul.f32 0.8, %v2415_v18  ;;  %v2420_v33 = vmul.f32 0.8, %v2416_v25  ;;  %v2421_v35 = vmul.f32 0.8, %v2417_v29 }
 0x138   : > { %4084 = vmatprep.subr.msk.mxu1 %vm515_vm1, %v2039_v26  ;;  %v2224_v36 = vcombine.low %v2217_v6, %v2218_v27  ;;  %v2423_v37 = vld [vmem:[#allocation2 + $0x5] ss:$8 sm:$0x3]  ;;  %v2425_v38 = vld [vmem:[#allocation2 + $0x15] ss:$8 sm:$0x3] }
 0x139   : > { %v2231_v39 = vrot.slane %v2223_v32, %v4339_v5  ;;  %4085 = vmatpush1.msk.msra.mxu1 %vm515_vm1, %v2032_v28  ;;  %v2427_v41 = vld [vmem:[#allocation2 + $0x25] ss:$8 sm:$0x3]  ;;  %v2429_v42 = vld [vmem:[#allocation2 + $0x35] ss:$8 sm:$0x3] }
 0x13a   : > { %v2238_v43 = vrot.slane %v2224_v36, %v4339_v5  ;;  %v2430_v44 = vmul.f32 0.2, %v2423_v37  ;;  %v2431_v45 = vmul.f32 0.2, %v2425_v38  ;;  %v2432_v46 = vmul.f32 0.2, %v2427_v41  ;;  %4086 = vmatmul.mubr.msk.f32.vlgmr.msra.gmra.mxu1 %vm511_vm2, %v4348_v34 }
 0x13b   : > { %v2433_v47 = vmul.f32 0.2, %v2429_v42  ;;  %v2633_v48 = vld [vmem:[#allocation2 + $0x4] ss:$8 sm:$0x3]  ;;  %2542 = vmatprep.mubr.f32.mxu1 %v4266_v17 }
 0x13c   : > { %v2239_v49 = vcombine.low %v2231_v39, %v2238_v43  ;;  %v2240_v50 = vcombine.high %v2231_v39, %v2238_v43  ;;  %v2434_v51 = vadd.f32 %v2430_v44, %v2418_v30  ;;  %v2435_v52 = vadd.f32 %v2431_v45, %v2419_v31  ;;  %v2634_v53 = vld [vmem:[#allocation2 + $0x14] ss:$8 sm:$0x3]  ;;  %v2635_v54 = vld [vmem:[#allocation2 + $0x24] ss:$8 sm:$0x3] }
 0x13d   : > { %v2436_v55 = vadd.f32 %v2432_v46, %v2420_v33  ;;  %v2437_v56 = vadd.f32 %v2433_v47, %v2421_v35  ;;  %v2636_v57 = vld [vmem:[#allocation2 + $0x34] ss:$8 sm:$0x3]  ;;  %v2637_v58 = vmul.f32 0.33333334, %v2633_v48 }
 0x13e   : > { %v2254_v59 = vrot.slane %v2240_v50, %v4339_v5  ;;  %v2247_v60 = vrot.slane %v2239_v49, %v4339_v5  ;;  %v2442_v61 = vcombine.low %v2434_v51, %v2435_v52  ;;  %v2638_v1 = vmul.f32 0.33333334, %v2634_v53  ;;  %v2641_v3 = vld [vmem:[#allocation2 + $0x5] ss:$8 sm:$0x3] }
 0x13f   : > { %v2443_v4 = vcombine.low %v2436_v55, %v2437_v56  ;;  %v2639_v62 = vmul.f32 0.33333334, %v2635_v54  ;;  %v2640_v63 = vmul.f32 0.33333334, %v2636_v57  ;;  %v2645_v0 = vmul.f32 0.6666667, %v2641_v3 }
 0x140   : > { %4095 = vmatprep.subr.msk.mxu0 %vm515_vm1, %v2254_v59  ;;  %v2642_v2 = vld [vmem:[#allocation2 + $0x15] ss:$8 sm:$0x3]  ;;  %v2643_v7 = vld [vmem:[#allocation2 + $0x25] ss:$8 sm:$0x3]  ;;  %v2450_v8 = vrot.slane %v2442_v61, %v4339_v5 }
 0x141   : > { %4096 = vmatpush1.msk.msra.mxu0 %vm515_vm1, %v2247_v60  ;;  %v2457_v9 = vrot.slane %v2443_v4, %v4339_v5  ;;  %v2644_v10 = vld [vmem:[#allocation2 + $0x35] ss:$8 sm:$0x3]  ;;  %v2646_v11 = vmul.f32 0.6666667, %v2642_v2  ;;  %v2649_v12 = vadd.f32 %v2645_v0, %v2637_v58 }
 0x142   : > { %v2647_v13 = vmul.f32 0.6666667, %v2643_v7  ;;  %v2648_v14 = vmul.f32 0.6666667, %v2644_v10  ;;  %4097 = vmatmul.mubr.msk.f32.vlgmr.msra.gmra.mxu0 %vm511_vm2, %v4348_v34 }
 0x143   : > { %v2458_v15 = vcombine.low %v2450_v8, %v2457_v9  ;;  %v2459_v16 = vcombine.high %v2450_v8, %v2457_v9  ;;  %v2650_v19 = vadd.f32 %v2646_v11, %v2638_v1  ;;  %v2848_v20 = vld [vmem:[#allocation2 + $0x5] ss:$8 sm:$0x3]  ;;  %v2849_v21 = vld [vmem:[#allocation2 + $0x15] ss:$8 sm:$0x3]  ;;  %2757 = vmatprep.mubr.f32.mxu0 %v4266_v17 }
 0x144   : > { %v2651_v22 = vadd.f32 %v2647_v13, %v2639_v62  ;;  %v2652_v23 = vadd.f32 %v2648_v14, %v2640_v63  ;;  %v2850_v24 = vld [vmem:[#allocation2 + $0x25] ss:$8 sm:$0x3]  ;;  %v2851_v6 = vld [vmem:[#allocation2 + $0x35] ss:$8 sm:$0x3] }
 0x145   : > { %v2473_v18 = vrot.slane %v2459_v16, %v4339_v5  ;;  %v2657_v25 = vcombine.low %v2649_v12, %v2650_v19  ;;  %v2466_v26 = vrot.slane %v2458_v15, %v4339_v5  ;;  %v2852_v27 = vmul.f32 0.8666667, %v2848_v20  ;;  %v2857_v28 = vld [vmem:[#allocation2 + $0x6] ss:$8 sm:$0x3] }
 0x146   : > { %v2658_v29 = vcombine.low %v2651_v22, %v2652_v23  ;;  %v2853_v30 = vmul.f32 0.8666667, %v2849_v21  ;;  %v2854_v32 = vmul.f32 0.8666667, %v2850_v24  ;;  %v2855_v31 = vmul.f32 0.8666667, %v2851_v6 }
 0x147   : > { %4106 = vmatprep.subr.msk.mxu1 %vm515_vm1, %v2473_v18  ;;  %v2859_v33 = vld [vmem:[#allocation2 + $0x16] ss:$8 sm:$0x3]  ;;  %v2861_v35 = vld [vmem:[#allocation2 + $0x26] ss:$8 sm:$0x3]  ;;  %v2665_v36 = vrot.slane %v2657_v25, %v4339_v5 }
 0x148   : > { %v2672_v37 = vrot.slane %v2658_v29, %v4339_v5  ;;  %4107 = vmatpush1.msk.msra.mxu1 %vm515_vm1, %v2466_v26  ;;  %v2863_v38 = vld [vmem:[#allocation2 + $0x36] ss:$8 sm:$0x3]  ;;  %v2864_v39 = vmul.f32 0.13333334, %v2857_v28 }
 0x149   : > { %v2865_v41 = vmul.f32 0.13333334, %v2859_v33  ;;  %v2866_v42 = vmul.f32 0.13333334, %v2861_v35  ;;  %v2867_v43 = vmul.f32 0.13333334, %v2863_v38  ;;  %4108 = vmatmul.mubr.msk.f32.vlgmr.msra.gmra.mxu1 %vm511_vm2, %v4348_v34 }
 0x14a   : > { %v2673_v44 = vcombine.low %v2665_v36, %v2672_v37  ;;  %v2674_v45 = vcombine.high %v2665_v36, %v2672_v37  ;;  %v2868_v46 = vadd.f32 %v2864_v39, %v2852_v27  ;;  %v3067_v47 = vld [vmem:[#allocation2 + $0x5] ss:$8 sm:$0x3]  ;;  %v3068_v48 = vld [vmem:[#allocation2 + $0x15] ss:$8 sm:$0x3]  ;;  %2976 = vmatprep.mubr.f32.mxu1 %v4266_v17 }
 0x14b   : > { %v2869_v49 = vadd.f32 %v2865_v41, %v2853_v30  ;;  %v2870_v50 = vadd.f32 %v2866_v42, %v2854_v32  ;;  %v2871_v51 = vadd.f32 %v2867_v43, %v2855_v31  ;;  %v3069_v52 = vld [vmem:[#allocation2 + $0x25] ss:$8 sm:$0x3]  ;;  %v3070_v53 = vld [vmem:[#allocation2 + $0x35] ss:$8 sm:$0x3] }
 0x14c   : > { %v2688_v54 = vrot.slane %v2674_v45, %v4339_v5  ;;  %v2681_v55 = vrot.slane %v2673_v44, %v4339_v5  ;;  %v3071_v56 = vmul.f32 0.4, %v3067_v47  ;;  %v3072_v57 = vmul.f32 0.4, %v3068_v48 }
 0x14d   : > { %v2876_v58 = vcombine.low %v2868_v46, %v2869_v49  ;;  %v2877_v59 = vcombine.low %v2870_v50, %v2871_v51  ;;  %v3073_v60 = vmul.f32 0.4, %v3069_v52  ;;  %v3074_v61 = vmul.f32 0.4, %v3070_v53 }
 0x14e   : > { %4117 = vmatprep.subr.msk.mxu0 %vm515_vm1, %v2688_v54  ;;  %v3075_v1 = vld [vmem:[#allocation2 + $0x6] ss:$8 sm:$0x3]  ;;  %v3076_v3 = vld [vmem:[#allocation2 + $0x16] ss:$8 sm:$0x3] }
 0x14f   : > { %4118 = vmatpush1.msk.msra.mxu0 %vm515_vm1, %v2681_v55  ;;  %v2884_v4 = vrot.slane %v2876_v58, %v4339_v5  ;;  %v2891_v62 = vrot.slane %v2877_v59, %v4339_v5  ;;  %v3077_v63 = vld [vmem:[#allocation2 + $0x26] ss:$8 sm:$0x3]  ;;  %v3078_v0 = vld [vmem:[#allocation2 + $0x36] ss:$8 sm:$0x3] }
 0x150   : > { %v3079_v2 = vmul.f32 0.6, %v3075_v1  ;;  %v3080_v7 = vmul.f32 0.6, %v3076_v3  ;;  %v3081_v8 = vmul.f32 0.6, %v3077_v63  ;;  %4119 = vmatmul.mubr.msk.f32.vlgmr.msra.gmra.mxu0 %vm511_vm2, %v4348_v34 }
 0x151   : > { %v2892_v9 = vcombine.low %v2884_v4, %v2891_v62  ;;  %v2893_v10 = vcombine.high %v2884_v4, %v2891_v62  ;;  %v3082_v11 = vmul.f32 0.6, %v3078_v0  ;;  %v3282_v12 = vld [vmem:[#allocation2 + $0x6] ss:$8 sm:$0x3]  ;;  %3191 = vmatprep.mubr.f32.mxu0 %v4266_v17 }
 0x152   : > { %v3083_v13 = vadd.f32 %v3079_v2, %v3071_v56  ;;  %v3084_v14 = vadd.f32 %v3080_v7, %v3072_v57  ;;  %v3085_v15 = vadd.f32 %v3081_v8, %v3073_v60  ;;  %v3283_v16 = vld [vmem:[#allocation2 + $0x16] ss:$8 sm:$0x3]  ;;  %v3284_v19 = vld [vmem:[#allocation2 + $0x26] ss:$8 sm:$0x3] }
 0x153   : > { %v2907_v20 = vrot.slane %v2893_v10, %v4339_v5  ;;  %v3086_v21 = vadd.f32 %v3082_v11, %v3074_v61  ;;  %v2900_v22 = vrot.slane %v2892_v9, %v4339_v5  ;;  %v3285_v23 = vld [vmem:[#allocation2 + $0x36] ss:$8 sm:$0x3]  ;;  %v3286_v24 = vmul.f32 0.93333334, %v3282_v12 }
 0x154   : > { %v3091_v6 = vcombine.low %v3083_v13, %v3084_v14  ;;  %v3287_v18 = vmul.f32 0.93333334, %v3283_v16  ;;  %v3288_v25 = vmul.f32 0.93333334, %v3284_v19  ;;  %v3289_v26 = vmul.f32 0.93333334, %v3285_v23 }
 0x155   : > { %4128 = vmatprep.subr.msk.mxu1 %vm515_vm1, %v2907_v20  ;;  %v3092_v27 = vcombine.low %v3085_v15, %v3086_v21  ;;  %v3291_v28 = vld [vmem:[#allocation2 + $0x7] ss:$8 sm:$0x3]  ;;  %v3293_v29 = vld [vmem:[#allocation2 + $0x17] ss:$8 sm:$0x3] }
 0x156   : > { %v3099_v30 = vrot.slane %v3091_v6, %v4339_v5  ;;  %4129 = vmatpush1.msk.msra.mxu1 %vm515_vm1, %v2900_v22  ;;  %v3295_v32 = vld [vmem:[#allocation2 + $0x27] ss:$8 sm:$0x3]  ;;  %v3297_v31 = vld [vmem:[#allocation2 + $0x37] ss:$8 sm:$0x3] }
 0x157   : > { %v3106_v33 = vrot.slane %v3092_v27, %v4339_v5  ;;  %v3298_v35 = vmul.f32 0.06666667, %v3291_v28  ;;  %v3299_v36 = vmul.f32 0.06666667, %v3293_v29  ;;  %v3300_v37 = vmul.f32 0.06666667, %v3295_v32  ;;  %4130 = vmatmul.mubr.msk.f32.vlgmr.msra.gmra.mxu1 %vm511_vm2, %v4348_v34 }
 0x158   : > { %v3301_v38 = vmul.f32 0.06666667, %v3297_v31  ;;  %v3501_v39 = vld [vmem:[#allocation2 + $0x6] ss:$8 sm:$0x3]  ;;  %3410 = vmatprep.mubr.f32.mxu1 %v4266_v17 }
 0x159   : > { %v3107_v41 = vcombine.low %v3099_v30, %v3106_v33  ;;  %v3108_v42 = vcombine.high %v3099_v30, %v3106_v33  ;;  %v3302_v43 = vadd.f32 %v3298_v35, %v3286_v24  ;;  %v3303_v44 = vadd.f32 %v3299_v36, %v3287_v18  ;;  %v3502_v45 = vld [vmem:[#allocation2 + $0x16] ss:$8 sm:$0x3]  ;;  %v3503_v46 = vld [vmem:[#allocation2 + $0x26] ss:$8 sm:$0x3] }
 0x15a   : > { %v3304_v47 = vadd.f32 %v3300_v37, %v3288_v25  ;;  %v3305_v48 = vadd.f32 %v3301_v38, %v3289_v26  ;;  %v3504_v49 = vld [vmem:[#allocation2 + $0x36] ss:$8 sm:$0x3]  ;;  %v3505_v50 = vmul.f32 0.46666667, %v3501_v39 }
 0x15b   : > { %v3122_v51 = vrot.slane %v3108_v42, %v4339_v5  ;;  %v3115_v52 = vrot.slane %v3107_v41, %v4339_v5  ;;  %v3310_v53 = vcombine.low %v3302_v43, %v3303_v44  ;;  %v3506_v54 = vmul.f32 0.46666667, %v3502_v45  ;;  %v3509_v55 = vld [vmem:[#allocation2 + $0x7] ss:$8 sm:$0x3] }
 0x15c   : > { %v3311_v56 = vcombine.low %v3304_v47, %v3305_v48  ;;  %v3507_v57 = vmul.f32 0.46666667, %v3503_v46  ;;  %v3508_v58 = vmul.f32 0.46666667, %v3504_v49  ;;  %v3513_v59 = vmul.f32 0.53333336, %v3509_v55 }
 0x15d   : > { %4139 = vmatprep.subr.msk.mxu0 %vm515_vm1, %v3122_v51  ;;  %v3510_v60 = vld [vmem:[#allocation2 + $0x17] ss:$8 sm:$0x3]  ;;  %v3511_v61 = vld [vmem:[#allocation2 + $0x27] ss:$8 sm:$0x3]  ;;  %v3318_v1 = vrot.slane %v3310_v53, %v4339_v5 }
 0x15e   : > { %4140 = vmatpush1.msk.msra.mxu0 %vm515_vm1, %v3115_v52  ;;  %v3325_v3 = vrot.slane %v3311_v56, %v4339_v5  ;;  %v3512_v4 = vld [vmem:[#allocation2 + $0x37] ss:$8 sm:$0x3]  ;;  %v3514_v62 = vmul.f32 0.53333336, %v3510_v60  ;;  %v3517_v63 = vadd.f32 %v3513_v59, %v3505_v50 }
 0x15f   : > { %v3515_v0 = vmul.f32 0.53333336, %v3511_v61  ;;  %v3516_v2 = vmul.f32 0.53333336, %v3512_v4  ;;  %4141 = vmatmul.mubr.msk.f32.vlgmr.msra.gmra.mxu0 %vm511_vm2, %v4348_v34 }
 0x160   : > { %v3326_v7 = vcombine.low %v3318_v1, %v3325_v3  ;;  %v3327_v8 = vcombine.high %v3318_v1, %v3325_v3  ;;  %v3518_v9 = vadd.f32 %v3514_v62, %v3506_v54  ;;  %v3716_v10 = vld [vmem:[#allocation2 + $0x7] ss:$8 sm:$0x3]  ;;  %v3717_v11 = vld [vmem:[#allocation2 + $0x17] ss:$8 sm:$0x3]  ;;  %3625 = vmatprep.mubr.f32.mxu0 %v4266_v17 }
 0x161   : > { %v3519_v12 = vadd.f32 %v3515_v0, %v3507_v57  ;;  %v3520_v13 = vadd.f32 %v3516_v2, %v3508_v58  ;;  %v3718_v14 = vld [vmem:[#allocation2 + $0x27] ss:$8 sm:$0x3]  ;;  %v3719_v15 = vld [vmem:[#allocation2 + $0x37] ss:$8 sm:$0x3]  ;;  %v3724_v16 = vcombine.low %v3716_v10, %v3717_v11 }
 0x162   : > { %v3341_v19 = vrot.slane %v3327_v8, %v4339_v5  ;;  %v3525_v20 = vcombine.low %v3517_v63, %v3518_v9  ;;  %v3725_v21 = vcombine.low %v3718_v14, %v3719_v15  ;;  %v3334_v23 = vrot.slane %v3326_v7, %v4339_v5 }
 0x163   : > { %v3526_v22 = vcombine.low %v3519_v12, %v3520_v13  ;;  %v3732_v24 = vrot.slane %v3724_v16, %v4339_v5 }
 0x164   : > { %4150 = vmatprep.subr.msk.mxu1 %vm515_vm1, %v3341_v19  ;;  %v3739_v6 = vrot.slane %v3725_v21, %v4339_v5  ;;  %v3533_v18 = vrot.slane %v3525_v20, %v4339_v5 }
 0x165   : > { %v3540_v25 = vrot.slane %v3526_v22, %v4339_v5  ;;  %4151 = vmatpush1.msk.msra.mxu1 %vm515_vm1, %v3334_v23 }
 0x166   : > { %v3740_v26 = vcombine.low %v3732_v24, %v3739_v6  ;;  %v3741_v27 = vcombine.high %v3732_v24, %v3739_v6  ;;  %4152 = vmatmul.mubr.msk.f32.vlgmr.msra.gmra.mxu1 %vm511_vm2, %v4348_v34 }
 0x167   : > { %v3541_v28 = vcombine.low %v3533_v18, %v3540_v25  ;;  %v3542_v29 = vcombine.high %v3533_v18, %v3540_v25  ;;  %3824 = vmatprep.mubr.f32.mxu1 %v4266_v17  ;;  %v4491_v17 = vpop.permute.xlu0 %472 }
 0x168   : > { %v3755_v30 = vrot.slane %v3741_v27, %v4339_v5  ;;  %v3748_v31 = vrot.slane %v3740_v26, %v4339_v5 }
 0x169   : > { %v3556_v32 = vrot.slane %v3542_v29, %v4339_v5  ;;  %v3549_v33 = vrot.slane %v3541_v28, %v4339_v5 }
 0x16a   : > { %4172 = vmatprep.subr.msk.mxu1 %vm515_vm1, %v3755_v30 }
 0x16b   : > { %4161 = vmatprep.subr.msk.mxu0 %vm515_vm1, %v3556_v32  ;;  %4173 = vmatpush1.msk.msra.mxu1 %vm515_vm1, %v3748_v31 }
 0x16c   : > { %4162 = vmatpush1.msk.msra.mxu0 %vm515_vm1, %v3549_v33  ;;  %4174 = vmatmul.mubr.msk.f32.vlgmr.msra.gmra.mxu1 %vm511_vm2, %v4348_v34 }
 0x16d   : > { %4163 = vmatmul.mubr.msk.f32.vlgmr.msra.gmra.mxu0 %vm511_vm2, %v4348_v34 }
 0x1d3   : > { %v586_v35 = vpop.f32.mrf.mxu0 }
 0x1d4   : > { %v587_v36 = vadd.f32 %v586_v35, %v4491_v17 }
 0x1d5   : > { %v588_v37 = vpop.f32.mrf.mxu0 }
 0x1d6   : > { %v589_v38 = vadd.f32 %v588_v37, %v4491_v17 }
 0x1d8   : > { %v593_v39 = vcombine.low %v587_v36, %v589_v38  ;;  %v594_v41 = vcombine.high %v587_v36, %v589_v38 }
 0x1d9   : > { %v808_v42 = vpop.f32.mrf.mxu1 }
 0x1da   : > { %v601_v43 = vrot.slane %v593_v39, %v4339_v5  ;;  %v608_v44 = vrot.slane %v594_v41, %v4339_v5  ;;  %v809_v50 = vadd.f32 %v808_v42, %v4491_v17 }
 0x1db   : > { %v810_v49 = vpop.f32.mrf.mxu1 }
 0x1dc   : > { %v609_v45 = vcombine.high %v601_v43, %v601_v43  ;;  %v610_v46 = vcombine.high %v608_v44, %v608_v44  ;;  %v617_v47 = vrot.slane %v601_v43, %v4339_v5  ;;  %v624_v48 = vrot.slane %v608_v44, %v4339_v5 }
 0x1dd   : > { %v811_v51 = vadd.f32 %v810_v49, %v4491_v17  ;;  %v1023_v55 = vpop.f32.mrf.mxu0 }
 0x1de   : > { %v631_v40 = vrot.slane %v609_v45, %v4339_v5  ;;  %v638_v52 = vrot.slane %v610_v46, %v4339_v5  ;;  %v639_v53 = vcombine.high %v617_v47, %v617_v47  ;;  %v640_v54 = vcombine.high %v624_v48, %v624_v48  ;;  %655 = vst.msk [vmem:[%s4501_s10] ss:$8 sm:$0x3] %vm4504_vm3, %v617_v47 }
 0x1df   : > { %4014 = vst.msk [vmem:[%s4501_s10 + $0x80] ss:$8 sm:$0x3] %vm4504_vm3, %v624_v48  ;;  %v815_v56 = vcombine.low %v809_v50, %v811_v51  ;;  %v816_v57 = vcombine.high %v809_v50, %v811_v51  ;;  %v1024_v60 = vadd.f32 %v1023_v55, %v4491_v17  ;;  %v1025_v61 = vpop.f32.mrf.mxu0 }
 0x1e0   : > { %v641_v58 = vcombine.high %v631_v40, %v631_v40  ;;  %v642_v59 = vcombine.high %v638_v52, %v638_v52  ;;  %4011 = vst.msk [vmem:[%s4501_s10 + $0x20] ss:$8 sm:$0x3] %vm4504_vm3, %v631_v40  ;;  %4012 = vst.msk [vmem:[%s4501_s10 + $0x40] ss:$8 sm:$0x3] %vm4504_vm3, %v639_v53  ;;  %v1026_v4 = vadd.f32 %v1025_v61, %v4491_v17 }
 0x1e1   : > { %4015 = vst.msk [vmem:[%s4501_s10 + $0xa0] ss:$8 sm:$0x3] %vm4504_vm3, %v638_v52  ;;  %4016 = vst.msk [vmem:[%s4501_s10 + $0xc0] ss:$8 sm:$0x3] %vm4504_vm3, %v640_v54  ;;  %v823_v1 = vrot.slane %v815_v56, %v4339_v5  ;;  %v830_v3 = vrot.slane %v816_v57, %v4339_v5 }
 0x1e2   : > { %4013 = vst.msk [vmem:[%s4501_s10 + $0x60] ss:$8 sm:$0x3] %vm4504_vm3, %v641_v58  ;;  %4017 = vst.msk [vmem:[%s4501_s10 + $0xe0] ss:$8 sm:$0x3] %vm4504_vm3, %v642_v59  ;;  %v1242_v7 = vpop.f32.mrf.mxu1  ;;  %v1030_v8 = vcombine.low %v1024_v60, %v1026_v4  ;;  %v1031_v9 = vcombine.high %v1024_v60, %v1026_v4 }
 0x1e3   : > { %v831_v62 = vcombine.high %v823_v1, %v823_v1  ;;  %v832_v63 = vcombine.high %v830_v3, %v830_v3  ;;  %v839_v0 = vrot.slane %v823_v1, %v4339_v5  ;;  %v846_v2 = vrot.slane %v830_v3, %v4339_v5 }
 0x1e4   : > { %v1244_v14 = vpop.f32.mrf.mxu1  ;;  %v1038_v15 = vrot.slane %v1030_v8, %v4339_v5  ;;  %v1045_v16 = vrot.slane %v1031_v9, %v4339_v5  ;;  %v1243_v23 = vadd.f32 %v1242_v7, %v4491_v17 }
 0x1e5   : > { %v853_v10 = vrot.slane %v831_v62, %v4339_v5  ;;  %v860_v11 = vrot.slane %v832_v63, %v4339_v5  ;;  %v861_v12 = vcombine.high %v839_v0, %v839_v0  ;;  %v862_v13 = vcombine.high %v846_v2, %v846_v2  ;;  %4021 = vst.msk [vmem:[%s4501_s10 + $0x1] ss:$8 sm:$0x3] %vm4504_vm3, %v839_v0  ;;  %v1457_v20 = vpop.f32.mrf.mxu0 }
 0x1e6   : > { %4025 = vst.msk [vmem:[%s4501_s10 + $0x81] ss:$8 sm:$0x3] %vm4504_vm3, %v846_v2  ;;  %v1245_v19 = vadd.f32 %v1244_v14, %v4491_v17  ;;  %v1458_v24 = vadd.f32 %v1457_v20, %v4491_v17  ;;  %v1046_v6 = vcombine.high %v1038_v15, %v1038_v15  ;;  %v1047_v18 = vcombine.high %v1045_v16, %v1045_v16 }
 0x1e7   : > { %v863_v21 = vcombine.high %v853_v10, %v853_v10  ;;  %v864_v22 = vcombine.high %v860_v11, %v860_v11  ;;  %4022 = vst.msk [vmem:[%s4501_s10 + $0x21] ss:$8 sm:$0x3] %vm4504_vm3, %v853_v10  ;;  %4023 = vst.msk [vmem:[%s4501_s10 + $0x41] ss:$8 sm:$0x3] %vm4504_vm3, %v861_v12  ;;  %v1054_v25 = vrot.slane %v1038_v15, %v4339_v5  ;;  %v1459_v27 = vpop.f32.mrf.mxu0 }
 0x1e8   : > { %4026 = vst.msk [vmem:[%s4501_s10 + $0xa1] ss:$8 sm:$0x3] %vm4504_vm3, %v860_v11  ;;  %4027 = vst.msk [vmem:[%s4501_s10 + $0xc1] ss:$8 sm:$0x3] %vm4504_vm3, %v862_v13  ;;  %v1061_v26 = vrot.slane %v1045_v16, %v4339_v5  ;;  %v1249_v28 = vcombine.low %v1243_v23, %v1245_v19  ;;  %v1250_v29 = vcombine.high %v1243_v23, %v1245_v19 }
 0x1e9   : > { %4024 = vst.msk [vmem:[%s4501_s10 + $0x61] ss:$8 sm:$0x3] %vm4504_vm3, %v863_v21  ;;  %4028 = vst.msk [vmem:[%s4501_s10 + $0xe1] ss:$8 sm:$0x3] %vm4504_vm3, %v864_v22  ;;  %v1460_v30 = vadd.f32 %v1459_v27, %v4491_v17  ;;  %v1068_v32 = vrot.slane %v1046_v6, %v4339_v5  ;;  %v1075_v31 = vrot.slane %v1047_v18, %v4339_v5 }
 0x1ea   : > { %v1076_v33 = vcombine.high %v1054_v25, %v1054_v25  ;;  %v1077_v35 = vcombine.high %v1061_v26, %v1061_v26  ;;  %4032 = vst.msk [vmem:[%s4501_s10 + $0x2] ss:$8 sm:$0x3] %vm4504_vm3, %v1054_v25  ;;  %4036 = vst.msk [vmem:[%s4501_s10 + $0x82] ss:$8 sm:$0x3] %vm4504_vm3, %v1061_v26  ;;  %v1257_v36 = vrot.slane %v1249_v28, %v4339_v5 }
 0x1eb   : > { %v1264_v37 = vrot.slane %v1250_v29, %v4339_v5  ;;  %v1464_v38 = vcombine.low %v1458_v24, %v1460_v30  ;;  %v1465_v39 = vcombine.high %v1458_v24, %v1460_v30  ;;  %v1078_v41 = vcombine.high %v1068_v32, %v1068_v32  ;;  %4033 = vst.msk [vmem:[%s4501_s10 + $0x22] ss:$8 sm:$0x3] %vm4504_vm3, %v1068_v32 }
 0x1ec   : > { %v1079_v42 = vcombine.high %v1075_v31, %v1075_v31  ;;  %4034 = vst.msk [vmem:[%s4501_s10 + $0x42] ss:$8 sm:$0x3] %vm4504_vm3, %v1076_v33  ;;  %4037 = vst.msk [vmem:[%s4501_s10 + $0xa2] ss:$8 sm:$0x3] %vm4504_vm3, %v1075_v31  ;;  %v1265_v43 = vcombine.high %v1257_v36, %v1257_v36  ;;  %v1273_v45 = vrot.slane %v1257_v36, %v4339_v5  ;;  %v1676_v47 = vpop.f32.mrf.mxu1 }
 0x1ed   : > { %4038 = vst.msk [vmem:[%s4501_s10 + $0xc2] ss:$8 sm:$0x3] %vm4504_vm3, %v1077_v35  ;;  %v1266_v44 = vcombine.high %v1264_v37, %v1264_v37  ;;  %v1280_v46 = vrot.slane %v1264_v37, %v4339_v5  ;;  %4035 = vst.msk [vmem:[%s4501_s10 + $0x62] ss:$8 sm:$0x3] %vm4504_vm3, %v1078_v41  ;;  %v1472_v48 = vrot.slane %v1464_v38, %v4339_v5 }
 0x1ee   : > { %4039 = vst.msk [vmem:[%s4501_s10 + $0xe2] ss:$8 sm:$0x3] %vm4504_vm3, %v1079_v42  ;;  %v1479_v49 = vrot.slane %v1465_v39, %v4339_v5  ;;  %v1287_v50 = vrot.slane %v1265_v43, %v4339_v5  ;;  %v1295_v40 = vcombine.high %v1273_v45, %v1273_v45  ;;  %4043 = vst.msk [vmem:[%s4501_s10 + $0x3] ss:$8 sm:$0x3] %vm4504_vm3, %v1273_v45  ;;  %v1678_v53 = vpop.f32.mrf.mxu1 }
 0x1ef   : > { %v1294_v51 = vrot.slane %v1266_v44, %v4339_v5  ;;  %v1296_v52 = vcombine.high %v1280_v46, %v1280_v46  ;;  %4047 = vst.msk [vmem:[%s4501_s10 + $0x83] ss:$8 sm:$0x3] %vm4504_vm3, %v1280_v46  ;;  %v1480_v54 = vcombine.high %v1472_v48, %v1472_v48  ;;  %v1488_v56 = vrot.slane %v1472_v48, %v4339_v5 }
 0x1f0   : > { %v1481_v55 = vcombine.high %v1479_v49, %v1479_v49  ;;  %v1495_v57 = vrot.slane %v1479_v49, %v4339_v5  ;;  %v1297_v58 = vcombine.high %v1287_v50, %v1287_v50  ;;  %4044 = vst.msk [vmem:[%s4501_s10 + $0x23] ss:$8 sm:$0x3] %vm4504_vm3, %v1287_v50  ;;  %4045 = vst.msk [vmem:[%s4501_s10 + $0x43] ss:$8 sm:$0x3] %vm4504_vm3, %v1295_v40 }
 0x1f1   : > { %v1298_v59 = vcombine.high %v1294_v51, %v1294_v51  ;;  %4048 = vst.msk [vmem:[%s4501_s10 + $0xa3] ss:$8 sm:$0x3] %vm4504_vm3, %v1294_v51  ;;  %4049 = vst.msk [vmem:[%s4501_s10 + $0xc3] ss:$8 sm:$0x3] %vm4504_vm3, %v1296_v52  ;;  %v1677_v60 = vadd.f32 %v1676_v47, %v4491_v17  ;;  %v1679_v61 = vadd.f32 %v1678_v53, %v4491_v17 }
 0x1f2   : > { %v1502_v1 = vrot.slane %v1480_v54, %v4339_v5  ;;  %v1509_v3 = vrot.slane %v1481_v55, %v4339_v5  ;;  %v1510_v4 = vcombine.high %v1488_v56, %v1488_v56  ;;  %v1511_v62 = vcombine.high %v1495_v57, %v1495_v57  ;;  %4054 = vst.msk [vmem:[%s4501_s10 + $0x4] ss:$8 sm:$0x3] %vm4504_vm3, %v1488_v56 }
 0x1f3   : > { %4058 = vst.msk [vmem:[%s4501_s10 + $0x84] ss:$8 sm:$0x3] %vm4504_vm3, %v1495_v57  ;;  %4046 = vst.msk [vmem:[%s4501_s10 + $0x63] ss:$8 sm:$0x3] %vm4504_vm3, %v1297_v58  ;;  %v1683_v63 = vcombine.low %v1677_v60, %v1679_v61  ;;  %v1684_v0 = vcombine.high %v1677_v60, %v1679_v61  ;;  %v1891_v8 = vpop.f32.mrf.mxu0 }
 0x1f4   : > { %4050 = vst.msk [vmem:[%s4501_s10 + $0xe3] ss:$8 sm:$0x3] %vm4504_vm3, %v1298_v59  ;;  %v1512_v2 = vcombine.high %v1502_v1, %v1502_v1  ;;  %v1513_v7 = vcombine.high %v1509_v3, %v1509_v3  ;;  %4055 = vst.msk [vmem:[%s4501_s10 + $0x24] ss:$8 sm:$0x3] %vm4504_vm3, %v1502_v1  ;;  %v1892_v11 = vadd.f32 %v1891_v8, %v4491_v17 }
 0x1f5   : > { %4056 = vst.msk [vmem:[%s4501_s10 + $0x44] ss:$8 sm:$0x3] %vm4504_vm3, %v1510_v4  ;;  %4059 = vst.msk [vmem:[%s4501_s10 + $0xa4] ss:$8 sm:$0x3] %vm4504_vm3, %v1509_v3  ;;  %v1691_v9 = vrot.slane %v1683_v63, %v4339_v5  ;;  %v1698_v10 = vrot.slane %v1684_v0, %v4339_v5  ;;  %v1893_v12 = vpop.f32.mrf.mxu0 }
 0x1f6   : > { %4060 = vst.msk [vmem:[%s4501_s10 + $0xc4] ss:$8 sm:$0x3] %vm4504_vm3, %v1511_v62  ;;  %4057 = vst.msk [vmem:[%s4501_s10 + $0x64] ss:$8 sm:$0x3] %vm4504_vm3, %v1512_v2  ;;  %v1894_v19 = vadd.f32 %v1893_v12, %v4491_v17 }
 0x1f7   : > { %4061 = vst.msk [vmem:[%s4501_s10 + $0xe4] ss:$8 sm:$0x3] %vm4504_vm3, %v1513_v7  ;;  %v1699_v13 = vcombine.high %v1691_v9, %v1691_v9  ;;  %v1700_v14 = vcombine.high %v1698_v10, %v1698_v10  ;;  %v1707_v15 = vrot.slane %v1691_v9, %v4339_v5  ;;  %v1714_v16 = vrot.slane %v1698_v10, %v4339_v5 }
 0x1f8   : > { %v1898_v24 = vcombine.low %v1892_v11, %v1894_v19  ;;  %v1899_v6 = vcombine.high %v1892_v11, %v1894_v19 }
 0x1f9   : > { %v1721_v20 = vrot.slane %v1699_v13, %v4339_v5  ;;  %v1728_v21 = vrot.slane %v1700_v14, %v4339_v5  ;;  %v1729_v22 = vcombine.high %v1707_v15, %v1707_v15  ;;  %v1730_v23 = vcombine.high %v1714_v16, %v1714_v16  ;;  %4065 = vst.msk [vmem:[%s4501_s10 + $0x5] ss:$8 sm:$0x3] %vm4504_vm3, %v1707_v15 }
 0x1fa   : > { %4069 = vst.msk [vmem:[%s4501_s10 + $0x85] ss:$8 sm:$0x3] %vm4504_vm3, %v1714_v16  ;;  %v2110_v26 = vpop.f32.mrf.mxu1  ;;  %v1906_v27 = vrot.slane %v1898_v24, %v4339_v5  ;;  %v1913_v28 = vrot.slane %v1899_v6, %v4339_v5 }
 0x1fb   : > { %v1731_v18 = vcombine.high %v1721_v20, %v1721_v20  ;;  %v1732_v25 = vcombine.high %v1728_v21, %v1728_v21  ;;  %4066 = vst.msk [vmem:[%s4501_s10 + $0x25] ss:$8 sm:$0x3] %vm4504_vm3, %v1721_v20  ;;  %4067 = vst.msk [vmem:[%s4501_s10 + $0x45] ss:$8 sm:$0x3] %vm4504_vm3, %v1729_v22  ;;  %v2111_v35 = vadd.f32 %v2110_v26, %v4491_v17 }
 0x1fc   : > { %4070 = vst.msk [vmem:[%s4501_s10 + $0xa5] ss:$8 sm:$0x3] %vm4504_vm3, %v1728_v21  ;;  %4071 = vst.msk [vmem:[%s4501_s10 + $0xc5] ss:$8 sm:$0x3] %vm4504_vm3, %v1730_v23  ;;  %v2112_v29 = vpop.f32.mrf.mxu1  ;;  %v1914_v30 = vcombine.high %v1906_v27, %v1906_v27  ;;  %v1915_v32 = vcombine.high %v1913_v28, %v1913_v28  ;;  %v1922_v31 = vrot.slane %v1906_v27, %v4339_v5 }
 0x1fd   : > { %4068 = vst.msk [vmem:[%s4501_s10 + $0x65] ss:$8 sm:$0x3] %vm4504_vm3, %v1731_v18  ;;  %4072 = vst.msk [vmem:[%s4501_s10 + $0xe5] ss:$8 sm:$0x3] %vm4504_vm3, %v1732_v25  ;;  %v1929_v33 = vrot.slane %v1913_v28, %v4339_v5  ;;  %v2113_v36 = vadd.f32 %v2112_v29, %v4491_v17 }
 0x1fe   : > { %v1936_v37 = vrot.slane %v1914_v30, %v4339_v5  ;;  %v1943_v38 = vrot.slane %v1915_v32, %v4339_v5  ;;  %v1944_v39 = vcombine.high %v1922_v31, %v1922_v31  ;;  %4076 = vst.msk [vmem:[%s4501_s10 + $0x6] ss:$8 sm:$0x3] %vm4504_vm3, %v1922_v31 }
 0x1ff   : > { %v1945_v41 = vcombine.high %v1929_v33, %v1929_v33  ;;  %4080 = vst.msk [vmem:[%s4501_s10 + $0x86] ss:$8 sm:$0x3] %vm4504_vm3, %v1929_v33  ;;  %v2117_v42 = vcombine.low %v2111_v35, %v2113_v36  ;;  %v2118_v43 = vcombine.high %v2111_v35, %v2113_v36 }
 0x200   : > { %v1946_v44 = vcombine.high %v1936_v37, %v1936_v37  ;;  %v1947_v45 = vcombine.high %v1943_v38, %v1943_v38  ;;  %4077 = vst.msk [vmem:[%s4501_s10 + $0x26] ss:$8 sm:$0x3] %vm4504_vm3, %v1936_v37  ;;  %4078 = vst.msk [vmem:[%s4501_s10 + $0x46] ss:$8 sm:$0x3] %vm4504_vm3, %v1944_v39 }
 0x201   : > { %4081 = vst.msk [vmem:[%s4501_s10 + $0xa6] ss:$8 sm:$0x3] %vm4504_vm3, %v1943_v38  ;;  %4082 = vst.msk [vmem:[%s4501_s10 + $0xc6] ss:$8 sm:$0x3] %vm4504_vm3, %v1945_v41  ;;  %v2125_v46 = vrot.slane %v2117_v42, %v4339_v5  ;;  %v2132_v47 = vrot.slane %v2118_v43, %v4339_v5 }
 0x202   : > { %v2325_v48 = vpop.f32.mrf.mxu0  ;;  %4079 = vst.msk [vmem:[%s4501_s10 + $0x66] ss:$8 sm:$0x3] %vm4504_vm3, %v1946_v44  ;;  %4083 = vst.msk [vmem:[%s4501_s10 + $0xe6] ss:$8 sm:$0x3] %vm4504_vm3, %v1947_v45 }
 0x203   : > { %v2326_v49 = vadd.f32 %v2325_v48, %v4491_v17  ;;  %v2133_v50 = vcombine.high %v2125_v46, %v2125_v46  ;;  %v2134_v51 = vcombine.high %v2132_v47, %v2132_v47  ;;  %v2141_v40 = vrot.slane %v2125_v46, %v4339_v5 }
 0x204   : > { %v2148_v52 = vrot.slane %v2132_v47, %v4339_v5  ;;  %v2327_v53 = vpop.f32.mrf.mxu0 }
 0x205   : > { %v2328_v54 = vadd.f32 %v2327_v53, %v4491_v17  ;;  %v2155_v55 = vrot.slane %v2133_v50, %v4339_v5  ;;  %v2162_v56 = vrot.slane %v2134_v51, %v4339_v5  ;;  %v2163_v57 = vcombine.high %v2141_v40, %v2141_v40  ;;  %4087 = vst.msk [vmem:[%s4501_s10 + $0x7] ss:$8 sm:$0x3] %vm4504_vm3, %v2141_v40 }
 0x206   : > { %v2164_v58 = vcombine.high %v2148_v52, %v2148_v52  ;;  %4091 = vst.msk [vmem:[%s4501_s10 + $0x87] ss:$8 sm:$0x3] %vm4504_vm3, %v2148_v52 }
 0x207   : > { %v2332_v59 = vcombine.low %v2326_v49, %v2328_v54  ;;  %v2333_v60 = vcombine.high %v2326_v49, %v2328_v54  ;;  %v2165_v61 = vcombine.high %v2155_v55, %v2155_v55  ;;  %v2166_v1 = vcombine.high %v2162_v56, %v2162_v56  ;;  %4088 = vst.msk [vmem:[%s4501_s10 + $0x27] ss:$8 sm:$0x3] %vm4504_vm3, %v2155_v55 }
 0x208   : > { %4089 = vst.msk [vmem:[%s4501_s10 + $0x47] ss:$8 sm:$0x3] %vm4504_vm3, %v2163_v57  ;;  %4092 = vst.msk [vmem:[%s4501_s10 + $0xa7] ss:$8 sm:$0x3] %vm4504_vm3, %v2162_v56 }
 0x209   : > { %4093 = vst.msk [vmem:[%s4501_s10 + $0xc7] ss:$8 sm:$0x3] %vm4504_vm3, %v2164_v58  ;;  %v2544_v3 = vpop.f32.mrf.mxu1  ;;  %v2340_v4 = vrot.slane %v2332_v59, %v4339_v5  ;;  %v2347_v62 = vrot.slane %v2333_v60, %v4339_v5  ;;  %4090 = vst.msk [vmem:[%s4501_s10 + $0x67] ss:$8 sm:$0x3] %vm4504_vm3, %v2165_v61 }
 0x20a   : > { %4094 = vst.msk [vmem:[%s4501_s10 + $0xe7] ss:$8 sm:$0x3] %vm4504_vm3, %v2166_v1  ;;  %v2545_v9 = vadd.f32 %v2544_v3, %v4491_v17 }
 0x20b   : > { %v2348_v63 = vcombine.high %v2340_v4, %v2340_v4  ;;  %v2349_v0 = vcombine.high %v2347_v62, %v2347_v62  ;;  %v2356_v2 = vrot.slane %v2340_v4, %v4339_v5  ;;  %v2363_v7 = vrot.slane %v2347_v62, %v4339_v5  ;;  %v2546_v8 = vpop.f32.mrf.mxu1 }
 0x20c   : > { %v2547_v10 = vadd.f32 %v2546_v8, %v4491_v17 }
 0x20d   : > { %v2370_v11 = vrot.slane %v2348_v63, %v4339_v5  ;;  %v2377_v12 = vrot.slane %v2349_v0, %v4339_v5  ;;  %v2378_v13 = vcombine.high %v2356_v2, %v2356_v2  ;;  %v2379_v14 = vcombine.high %v2363_v7, %v2363_v7  ;;  %4098 = vst.msk [vmem:[%s4501_s10 + $0x10] ss:$8 sm:$0x3] %vm4504_vm3, %v2356_v2 }
 0x20e   : > { %4102 = vst.msk [vmem:[%s4501_s10 + $0x90] ss:$8 sm:$0x3] %vm4504_vm3, %v2363_v7  ;;  %v2551_v15 = vcombine.low %v2545_v9, %v2547_v10  ;;  %v2552_v16 = vcombine.high %v2545_v9, %v2547_v10 }
 0x20f   : > { %v2380_v19 = vcombine.high %v2370_v11, %v2370_v11  ;;  %v2381_v20 = vcombine.high %v2377_v12, %v2377_v12  ;;  %4099 = vst.msk [vmem:[%s4501_s10 + $0x30] ss:$8 sm:$0x3] %vm4504_vm3, %v2370_v11  ;;  %4100 = vst.msk [vmem:[%s4501_s10 + $0x50] ss:$8 sm:$0x3] %vm4504_vm3, %v2378_v13 }
 0x210   : > { %4103 = vst.msk [vmem:[%s4501_s10 + $0xb0] ss:$8 sm:$0x3] %vm4504_vm3, %v2377_v12  ;;  %4104 = vst.msk [vmem:[%s4501_s10 + $0xd0] ss:$8 sm:$0x3] %vm4504_vm3, %v2379_v14  ;;  %v2559_v21 = vrot.slane %v2551_v15, %v4339_v5  ;;  %v2566_v22 = vrot.slane %v2552_v16, %v4339_v5  ;;  %v2759_v23 = vpop.f32.mrf.mxu0 }
 0x211   : > { %4101 = vst.msk [vmem:[%s4501_s10 + $0x70] ss:$8 sm:$0x3] %vm4504_vm3, %v2380_v19  ;;  %4105 = vst.msk [vmem:[%s4501_s10 + $0xf0] ss:$8 sm:$0x3] %vm4504_vm3, %v2381_v20  ;;  %v2760_v24 = vadd.f32 %v2759_v23, %v4491_v17 }
 0x212   : > { %v2567_v6 = vcombine.high %v2559_v21, %v2559_v21  ;;  %v2568_v18 = vcombine.high %v2566_v22, %v2566_v22  ;;  %v2575_v25 = vrot.slane %v2559_v21, %v4339_v5  ;;  %v2582_v26 = vrot.slane %v2566_v22, %v4339_v5  ;;  %v2761_v27 = vpop.f32.mrf.mxu0 }
 0x213   : > { %v2762_v28 = vadd.f32 %v2761_v27, %v4491_v17 }
 0x214   : > { %v2589_v29 = vrot.slane %v2567_v6, %v4339_v5  ;;  %v2596_v30 = vrot.slane %v2568_v18, %v4339_v5  ;;  %v2597_v32 = vcombine.high %v2575_v25, %v2575_v25  ;;  %v2598_v31 = vcombine.high %v2582_v26, %v2582_v26  ;;  %4109 = vst.msk [vmem:[%s4501_s10 + $0x11] ss:$8 sm:$0x3] %vm4504_vm3, %v2575_v25 }
 0x215   : > { %4113 = vst.msk [vmem:[%s4501_s10 + $0x91] ss:$8 sm:$0x3] %vm4504_vm3, %v2582_v26  ;;  %v2766_v33 = vcombine.low %v2760_v24, %v2762_v28  ;;  %v2767_v35 = vcombine.high %v2760_v24, %v2762_v28 }
 0x216   : > { %v2599_v36 = vcombine.high %v2589_v29, %v2589_v29  ;;  %v2600_v37 = vcombine.high %v2596_v30, %v2596_v30  ;;  %4110 = vst.msk [vmem:[%s4501_s10 + $0x31] ss:$8 sm:$0x3] %vm4504_vm3, %v2589_v29  ;;  %4111 = vst.msk [vmem:[%s4501_s10 + $0x51] ss:$8 sm:$0x3] %vm4504_vm3, %v2597_v32 }
 0x217   : > { %4114 = vst.msk [vmem:[%s4501_s10 + $0xb1] ss:$8 sm:$0x3] %vm4504_vm3, %v2596_v30  ;;  %4115 = vst.msk [vmem:[%s4501_s10 + $0xd1] ss:$8 sm:$0x3] %vm4504_vm3, %v2598_v31  ;;  %v2978_v38 = vpop.f32.mrf.mxu1  ;;  %v2774_v39 = vrot.slane %v2766_v33, %v4339_v5  ;;  %v2781_v41 = vrot.slane %v2767_v35, %v4339_v5 }
 0x218   : > { %4112 = vst.msk [vmem:[%s4501_s10 + $0x71] ss:$8 sm:$0x3] %vm4504_vm3, %v2599_v36  ;;  %4116 = vst.msk [vmem:[%s4501_s10 + $0xf1] ss:$8 sm:$0x3] %vm4504_vm3, %v2600_v37  ;;  %v2979_v47 = vadd.f32 %v2978_v38, %v4491_v17 }
 0x219   : > { %v2782_v42 = vcombine.high %v2774_v39, %v2774_v39  ;;  %v2783_v43 = vcombine.high %v2781_v41, %v2781_v41  ;;  %v2790_v44 = vrot.slane %v2774_v39, %v4339_v5  ;;  %v2797_v45 = vrot.slane %v2781_v41, %v4339_v5  ;;  %v2980_v46 = vpop.f32.mrf.mxu1 }
 0x21a   : > { %v2981_v48 = vadd.f32 %v2980_v46, %v4491_v17 }
 0x21b   : > { %v2804_v49 = vrot.slane %v2782_v42, %v4339_v5  ;;  %v2811_v50 = vrot.slane %v2783_v43, %v4339_v5  ;;  %v2812_v51 = vcombine.high %v2790_v44, %v2790_v44  ;;  %v2813_v40 = vcombine.high %v2797_v45, %v2797_v45  ;;  %4120 = vst.msk [vmem:[%s4501_s10 + $0x12] ss:$8 sm:$0x3] %vm4504_vm3, %v2790_v44 }
 0x21c   : > { %4124 = vst.msk [vmem:[%s4501_s10 + $0x92] ss:$8 sm:$0x3] %vm4504_vm3, %v2797_v45  ;;  %v2985_v52 = vcombine.low %v2979_v47, %v2981_v48  ;;  %v2986_v53 = vcombine.high %v2979_v47, %v2981_v48 }
 0x21d   : > { %v2814_v54 = vcombine.high %v2804_v49, %v2804_v49  ;;  %v2815_v55 = vcombine.high %v2811_v50, %v2811_v50  ;;  %4121 = vst.msk [vmem:[%s4501_s10 + $0x32] ss:$8 sm:$0x3] %vm4504_vm3, %v2804_v49  ;;  %4122 = vst.msk [vmem:[%s4501_s10 + $0x52] ss:$8 sm:$0x3] %vm4504_vm3, %v2812_v51 }
 0x21e   : > { %4125 = vst.msk [vmem:[%s4501_s10 + $0xb2] ss:$8 sm:$0x3] %vm4504_vm3, %v2811_v50  ;;  %4126 = vst.msk [vmem:[%s4501_s10 + $0xd2] ss:$8 sm:$0x3] %vm4504_vm3, %v2813_v40  ;;  %v2993_v56 = vrot.slane %v2985_v52, %v4339_v5  ;;  %v3000_v57 = vrot.slane %v2986_v53, %v4339_v5 }
 0x21f   : > { %4123 = vst.msk [vmem:[%s4501_s10 + $0x72] ss:$8 sm:$0x3] %vm4504_vm3, %v2814_v54  ;;  %4127 = vst.msk [vmem:[%s4501_s10 + $0xf2] ss:$8 sm:$0x3] %vm4504_vm3, %v2815_v55  ;;  %v3193_v58 = vpop.f32.mrf.mxu0 }
 0x220   : > { %v3001_v59 = vcombine.high %v2993_v56, %v2993_v56  ;;  %v3002_v60 = vcombine.high %v3000_v57, %v3000_v57  ;;  %v3009_v61 = vrot.slane %v2993_v56, %v4339_v5  ;;  %v3016_v1 = vrot.slane %v3000_v57, %v4339_v5 }
 0x221   : > { %v3194_v3 = vadd.f32 %v3193_v58, %v4491_v17  ;;  %v3195_v4 = vpop.f32.mrf.mxu0 }
 0x222   : > { %v3023_v62 = vrot.slane %v3001_v59, %v4339_v5  ;;  %v3030_v63 = vrot.slane %v3002_v60, %v4339_v5  ;;  %v3031_v0 = vcombine.high %v3009_v61, %v3009_v61  ;;  %v3032_v2 = vcombine.high %v3016_v1, %v3016_v1  ;;  %4131 = vst.msk [vmem:[%s4501_s10 + $0x13] ss:$8 sm:$0x3] %vm4504_vm3, %v3009_v61 }
 0x223   : > { %4135 = vst.msk [vmem:[%s4501_s10 + $0x93] ss:$8 sm:$0x3] %vm4504_vm3, %v3016_v1  ;;  %v3196_v7 = vadd.f32 %v3195_v4, %v4491_v17 }
 0x224   : > { %v3033_v8 = vcombine.high %v3023_v62, %v3023_v62  ;;  %v3034_v9 = vcombine.high %v3030_v63, %v3030_v63  ;;  %4132 = vst.msk [vmem:[%s4501_s10 + $0x33] ss:$8 sm:$0x3] %vm4504_vm3, %v3023_v62  ;;  %4133 = vst.msk [vmem:[%s4501_s10 + $0x53] ss:$8 sm:$0x3] %vm4504_vm3, %v3031_v0 }
 0x225   : > { %4136 = vst.msk [vmem:[%s4501_s10 + $0xb3] ss:$8 sm:$0x3] %vm4504_vm3, %v3030_v63  ;;  %4137 = vst.msk [vmem:[%s4501_s10 + $0xd3] ss:$8 sm:$0x3] %vm4504_vm3, %v3032_v2  ;;  %v3200_v10 = vcombine.low %v3194_v3, %v3196_v7  ;;  %v3201_v11 = vcombine.high %v3194_v3, %v3196_v7 }
 0x226   : > { %4134 = vst.msk [vmem:[%s4501_s10 + $0x73] ss:$8 sm:$0x3] %vm4504_vm3, %v3033_v8  ;;  %4138 = vst.msk [vmem:[%s4501_s10 + $0xf3] ss:$8 sm:$0x3] %vm4504_vm3, %v3034_v9  ;;  %v3412_v12 = vpop.f32.mrf.mxu1 }
 0x227   : > { %v3208_v13 = vrot.slane %v3200_v10, %v4339_v5  ;;  %v3215_v14 = vrot.slane %v3201_v11, %v4339_v5  ;;  %v3413_v22 = vadd.f32 %v3412_v12, %v4491_v17 }
 0x228   : > { %v3414_v15 = vpop.f32.mrf.mxu1 }
 0x229   : > { %v3216_v16 = vcombine.high %v3208_v13, %v3208_v13  ;;  %v3217_v19 = vcombine.high %v3215_v14, %v3215_v14  ;;  %v3224_v20 = vrot.slane %v3208_v13, %v4339_v5  ;;  %v3231_v21 = vrot.slane %v3215_v14, %v4339_v5 }
 0x22a   : > { %v3415_v23 = vadd.f32 %v3414_v15, %v4491_v17 }
 0x22b   : > { %v3238_v24 = vrot.slane %v3216_v16, %v4339_v5  ;;  %v3245_v6 = vrot.slane %v3217_v19, %v4339_v5  ;;  %v3246_v18 = vcombine.high %v3224_v20, %v3224_v20  ;;  %v3247_v25 = vcombine.high %v3231_v21, %v3231_v21  ;;  %4142 = vst.msk [vmem:[%s4501_s10 + $0x14] ss:$8 sm:$0x3] %vm4504_vm3, %v3224_v20 }
 0x22c   : > { %4146 = vst.msk [vmem:[%s4501_s10 + $0x94] ss:$8 sm:$0x3] %vm4504_vm3, %v3231_v21  ;;  %v3419_v26 = vcombine.low %v3413_v22, %v3415_v23  ;;  %v3420_v27 = vcombine.high %v3413_v22, %v3415_v23  ;;  %v3826_v28 = vpop.f32.mrf.mxu1 }
 0x22d   : > { %v3248_v29 = vcombine.high %v3238_v24, %v3238_v24  ;;  %v3249_v30 = vcombine.high %v3245_v6, %v3245_v6  ;;  %4143 = vst.msk [vmem:[%s4501_s10 + $0x34] ss:$8 sm:$0x3] %vm4504_vm3, %v3238_v24  ;;  %4144 = vst.msk [vmem:[%s4501_s10 + $0x54] ss:$8 sm:$0x3] %vm4504_vm3, %v3246_v18  ;;  %v3627_v32 = vpop.f32.mrf.mxu0  ;;  %v3827_v37 = vadd.f32 %v3826_v28, %v4491_v17 }
 0x22e   : > { %4147 = vst.msk [vmem:[%s4501_s10 + $0xb4] ss:$8 sm:$0x3] %vm4504_vm3, %v3245_v6  ;;  %4148 = vst.msk [vmem:[%s4501_s10 + $0xd4] ss:$8 sm:$0x3] %vm4504_vm3, %v3247_v25  ;;  %v3427_v31 = vrot.slane %v3419_v26, %v4339_v5  ;;  %v3434_v33 = vrot.slane %v3420_v27, %v4339_v5  ;;  %v3828_v35 = vpop.f32.mrf.mxu1  ;;  %v3628_v36 = vadd.f32 %v3627_v32, %v4491_v17 }
 0x22f   : > { %4145 = vst.msk [vmem:[%s4501_s10 + $0x74] ss:$8 sm:$0x3] %vm4504_vm3, %v3248_v29  ;;  %4149 = vst.msk [vmem:[%s4501_s10 + $0xf4] ss:$8 sm:$0x3] %vm4504_vm3, %v3249_v30  ;;  %v3629_v38 = vpop.f32.mrf.mxu0  ;;  %v3829_v39 = vadd.f32 %v3828_v35, %v4491_v17 }
 0x230   : > { %v3435_v41 = vcombine.high %v3427_v31, %v3427_v31  ;;  %v3436_v42 = vcombine.high %v3434_v33, %v3434_v33  ;;  %v3443_v43 = vrot.slane %v3427_v31, %v4339_v5  ;;  %v3450_v44 = vrot.slane %v3434_v33, %v4339_v5 }
 0x231   : > { %v3630_v45 = vadd.f32 %v3629_v38, %v4491_v17  ;;  %v3833_v46 = vcombine.low %v3827_v37, %v3829_v39  ;;  %v3834_v47 = vcombine.high %v3827_v37, %v3829_v39 }
 0x232   : > { %v3457_v48 = vrot.slane %v3435_v41, %v4339_v5  ;;  %v3464_v49 = vrot.slane %v3436_v42, %v4339_v5  ;;  %v3465_v50 = vcombine.high %v3443_v43, %v3443_v43  ;;  %v3466_v51 = vcombine.high %v3450_v44, %v3450_v44  ;;  %4153 = vst.msk [vmem:[%s4501_s10 + $0x15] ss:$8 sm:$0x3] %vm4504_vm3, %v3443_v43 }
 0x233   : > { %4157 = vst.msk [vmem:[%s4501_s10 + $0x95] ss:$8 sm:$0x3] %vm4504_vm3, %v3450_v44  ;;  %v3634_v17 = vcombine.low %v3628_v36, %v3630_v45  ;;  %v3635_v40 = vcombine.high %v3628_v36, %v3630_v45  ;;  %v3841_v52 = vrot.slane %v3833_v46, %v4339_v5  ;;  %v3848_v53 = vrot.slane %v3834_v47, %v4339_v5 }
 0x234   : > { %v3467_v54 = vcombine.high %v3457_v48, %v3457_v48  ;;  %v3468_v55 = vcombine.high %v3464_v49, %v3464_v49  ;;  %4154 = vst.msk [vmem:[%s4501_s10 + $0x35] ss:$8 sm:$0x3] %vm4504_vm3, %v3457_v48  ;;  %4155 = vst.msk [vmem:[%s4501_s10 + $0x55] ss:$8 sm:$0x3] %vm4504_vm3, %v3465_v50 }
 0x235   : > { %4158 = vst.msk [vmem:[%s4501_s10 + $0xb5] ss:$8 sm:$0x3] %vm4504_vm3, %v3464_v49  ;;  %4159 = vst.msk [vmem:[%s4501_s10 + $0xd5] ss:$8 sm:$0x3] %vm4504_vm3, %v3466_v51  ;;  %v3642_v56 = vrot.slane %v3634_v17, %v4339_v5  ;;  %v3649_v57 = vrot.slane %v3635_v40, %v4339_v5  ;;  %v3849_v58 = vcombine.high %v3841_v52, %v3841_v52 }
 0x236   : > { %v3850_v59 = vcombine.high %v3848_v53, %v3848_v53  ;;  %4156 = vst.msk [vmem:[%s4501_s10 + $0x75] ss:$8 sm:$0x3] %vm4504_vm3, %v3467_v54  ;;  %4160 = vst.msk [vmem:[%s4501_s10 + $0xf5] ss:$8 sm:$0x3] %vm4504_vm3, %v3468_v55  ;;  %v3857_v60 = vrot.slane %v3841_v52, %v4339_v5  ;;  %v3864_v61 = vrot.slane %v3848_v53, %v4339_v5 }
 0x237   : > { %v3650_v1 = vcombine.high %v3642_v56, %v3642_v56  ;;  %v3651_v3 = vcombine.high %v3649_v57, %v3649_v57  ;;  %v3658_v4 = vrot.slane %v3642_v56, %v4339_v5  ;;  %v3665_v62 = vrot.slane %v3649_v57, %v4339_v5 }
 0x238   : > { %v3871_v63 = vrot.slane %v3849_v58, %v4339_v5  ;;  %v3878_v0 = vrot.slane %v3850_v59, %v4339_v5  ;;  %v3879_v2 = vcombine.high %v3857_v60, %v3857_v60  ;;  %v3880_v7 = vcombine.high %v3864_v61, %v3864_v61  ;;  %4175 = vst.msk [vmem:[%s4501_s10 + $0x17] ss:$8 sm:$0x3] %vm4504_vm3, %v3857_v60 }
 0x239   : > { %4179 = vst.msk [vmem:[%s4501_s10 + $0x97] ss:$8 sm:$0x3] %vm4504_vm3, %v3864_v61  ;;  %v3672_v8 = vrot.slane %v3650_v1, %v4339_v5  ;;  %v3679_v9 = vrot.slane %v3651_v3, %v4339_v5  ;;  %v3680_v10 = vcombine.high %v3658_v4, %v3658_v4  ;;  %v3681_v11 = vcombine.high %v3665_v62, %v3665_v62 }
 0x23a   : > { %4164 = vst.msk [vmem:[%s4501_s10 + $0x16] ss:$8 sm:$0x3] %vm4504_vm3, %v3658_v4  ;;  %4168 = vst.msk [vmem:[%s4501_s10 + $0x96] ss:$8 sm:$0x3] %vm4504_vm3, %v3665_v62  ;;  %v3881_v12 = vcombine.high %v3871_v63, %v3871_v63  ;;  %v3882_v13 = vcombine.high %v3878_v0, %v3878_v0 }
 0x23b   : > { %4176 = vst.msk [vmem:[%s4501_s10 + $0x37] ss:$8 sm:$0x3] %vm4504_vm3, %v3871_v63  ;;  %4177 = vst.msk [vmem:[%s4501_s10 + $0x57] ss:$8 sm:$0x3] %vm4504_vm3, %v3879_v2  ;;  %v3682_v5 = vcombine.high %v3672_v8, %v3672_v8  ;;  %v3683_v14 = vcombine.high %v3679_v9, %v3679_v9 }
 0x23c   : > { %4180 = vst.msk [vmem:[%s4501_s10 + $0xb7] ss:$8 sm:$0x3] %vm4504_vm3, %v3878_v0  ;;  %4181 = vst.msk [vmem:[%s4501_s10 + $0xd7] ss:$8 sm:$0x3] %vm4504_vm3, %v3880_v7 }
 0x23d   : > { %4165 = vst.msk [vmem:[%s4501_s10 + $0x36] ss:$8 sm:$0x3] %vm4504_vm3, %v3672_v8  ;;  %4166 = vst.msk [vmem:[%s4501_s10 + $0x56] ss:$8 sm:$0x3] %vm4504_vm3, %v3680_v10 }
 0x23e   : > { %4169 = vst.msk [vmem:[%s4501_s10 + $0xb6] ss:$8 sm:$0x3] %vm4504_vm3, %v3679_v9  ;;  %4170 = vst.msk [vmem:[%s4501_s10 + $0xd6] ss:$8 sm:$0x3] %vm4504_vm3, %v3681_v11 }
 0x23f   : > { %4178 = vst.msk [vmem:[%s4501_s10 + $0x77] ss:$8 sm:$0x3] %vm4504_vm3, %v3881_v12  ;;  %4182 = vst.msk [vmem:[%s4501_s10 + $0xf7] ss:$8 sm:$0x3] %vm4504_vm3, %v3882_v13 }
 0x240   : > { %4167 = vst.msk [vmem:[%s4501_s10 + $0x76] ss:$8 sm:$0x3] %vm4504_vm3, %v3682_v5  ;;  %4171 = vst.msk [vmem:[%s4501_s10 + $0xf6] ss:$8 sm:$0x3] %vm4504_vm3, %v3683_v14 }
 0x241 PF: > { %s15_s15 = sadd.s32 1, %s4260_s15  }
 0x242   : > { %p12_p1 = scmp.ge.s32.totalorder %s15_s15, 4  }
 0x244   :  { %14 = sbr.rel (!%p12_p1) target bundleno = 1 (0x1), region = 235 }
 0x249   :  { %3936 = vsyncpa [#allocation4], 1 }
 0x24a   :  { %3938 = vsyncpa [#allocation4 + $0x1], 1 }

</bundles_post_ra>
